<compile_context>
chip_gen: v6e
topology: v6e:2x2x1
jax: 0.10.0
libtpu: 0.0.40
codegen_flags: <defaults>
</compile_context>

<pallas_src>
import functools
import math

import jax
import jax.numpy as jnp
import numpy as np
from jax.experimental import pallas as pl
from jax.experimental.pallas import tpu as pltpu


# ---------------------------------------------------------------------------
# Kernel 1: fused LayerNorm + Conv2d(k=2,s=2) + Conv2d(k=4,s=2,p=1) + concat,
# plus per-batch channel sums (for the ECA global average pool).
# One batch element per grid step ("parallel").
# ---------------------------------------------------------------------------
def _merge_conv_kernel(x_ref, lng_ref, lnb_ref, w_ref, bias_ref,
                       y_ref, sum_ref, scr_ref,
                       *, H, W, C, Co, Wc, eps, compute_dtype):
    Ho, Wo = H // 2, W // 2
    C2, C4, Cout2 = 2 * C, 4 * C, 2 * Co
    Hp = Ho + 4
    Q = Ho * Wc                        # extended (halo-padded-width) GEMM M dimension

    # x_ref: (Ho, 2, Wo, 2C) -- last dim packs the two pixels of a width-pair:
    #        lane u = dx*C + c  <->  x[2i+p, 2J+dx, c]
    xv = x_ref[...]

    # ---- LayerNorm over each pixel's C channels (the two lane halves) -------
    def _ln(v):                                      # v: (Ho, 2, Wo, C)
        m = jnp.mean(v, axis=-1, keepdims=True)
        c = v - m
        var = jnp.mean(c * c, axis=-1, keepdims=True)
        return c * jax.lax.rsqrt(var + eps)

    g, bshift = lng_ref[...], lnb_ref[...]           # (1, C) each, broadcast over (..., C)
    xa = _ln(xv[..., :C]) * g + bshift
    xb = _ln(xv[..., C:]) * g + bshift
    xn = jnp.concatenate([xa, xb], axis=-1)          # (Ho, 2, Wo, 2C), f32

    # ---- zero-padded even/odd-row planes in VMEM scratch ---------------------
    # scratch layout (Hp, Wc, 4C): lanes [0:2C] = even input rows (placed at row p = i+1),
    #                              lanes [2C:4C] = odd input rows (placed at row p = i+2),
    #                              columns offset by 1 (zero border = conv padding).
    scr_ref[...] = jnp.zeros(scr_ref.shape, scr_ref.dtype)
    scr_ref[pl.ds(1, Ho), pl.ds(1, Wo), pl.ds(0, C2)] = xn[:, 0]
    scr_ref[pl.ds(2, Ho), pl.ds(1, Wo), pl.ds(C2, C2)] = xn[:, 1]

    # ---- both convs as 6 shifted matmuls on the flattened padded buffer ------
    # acc row m = i*Wc + j ; tap (a, b) reads flat row m + a*Wc + b (always in range).
    pf = scr_ref[...].reshape(Hp * Wc, C4)           # Wc is a multiple of 8 -> cheap merge
    acc = jnp.zeros((Q, Cout2), jnp.float32)
    t = 0
    for a in (1, 2):
        for b in (0, 1, 2):
            s = a * Wc + b
            op = pf[s:s + Q, :].astype(compute_dtype)
            acc = acc + jnp.dot(op, w_ref[t], preferred_element_type=jnp.float32)
            t += 1
    acc = acc + bias_ref[...]                        # single fused bias add (b1|b2)

    out = acc.reshape(Ho, Wc, Cout2)[:, :Wo, :]      # drop halo / alignment garbage cols
    y_ref[0] = out.astype(y_ref.dtype)

    # per-batch channel sums for the ECA global average pool
    s1 = jnp.sum(out, axis=0)                        # (Wo, 2Co)
    sum_ref[0] = jnp.sum(s1, axis=0, keepdims=True)  # (1, 2Co)


# ---------------------------------------------------------------------------
# Kernel 2: ECA gate apply  out = y * (1 + sigmoid_gate), written channels-major
# (lane-dense last dim = H/2*W/2) so the wrapper only needs a free reshape to NCHW.
# ---------------------------------------------------------------------------
def _eca_apply_kernel(y_ref, gate_ref, o_ref):
    y = y_ref[0]                                     # (HW, 2Co)
    scale = 1.0 + gate_ref[0]                        # (1, 2Co)
    o_ref[0] = jnp.transpose(y * scale, (1, 0)).astype(o_ref.dtype)


# ---------------------------------------------------------------------------
# Weight packing: Conv(k=2,s=2) and Conv(k=4,s=2,p=1) -> 6 (K=4C, N=2Co) tap matrices.
# ---------------------------------------------------------------------------
def _pack_tap_weights(w1, w2, C, Co):
    wt = jnp.zeros((6, 4 * C, 2 * Co), jnp.float32)
    for a in (1, 2):
        for b in (0, 1, 2):
            t = (a - 1) * 3 + b
            for plane in (0, 1):                     # 0: even input rows, 1: odd input rows
                for dx in (0, 1):
                    r0 = plane * 2 * C + dx * C
                    # conv k=2, s=2, p=0  : input (2i+ky, 2j+kx)
                    ky1 = 2 * a - 2 - plane
                    kx1 = 2 * b - 2 + dx
                    if 0 <= ky1 <= 1 and 0 <= kx1 <= 1:
                        wt = wt.at[t, r0:r0 + C, 0:Co].set(jnp.transpose(w1[:, :, ky1, kx1]))
                    # conv k=4, s=2, p=1  : input (2i+ky-1, 2j+kx-1)
                    ky2 = 2 * a - 1 - plane
                    kx2 = 2 * b + dx - 1
                    if 0 <= ky2 <= 3 and 0 <= kx2 <= 3:
                        wt = wt.at[t, r0:r0 + C, Co:2 * Co].set(jnp.transpose(w2[:, :, ky2, kx2]))
    return wt


# ---------------------------------------------------------------------------
# Public wrapper
# ---------------------------------------------------------------------------
def patch_merging_forward(x, params, compute_dtype=jnp.bfloat16):
    B, L, C = x.shape
    H = int(round(math.sqrt(L)))
    W = H
    assert H * W == L and H % 2 == 0 and W % 2 == 0
    Ho, Wo = H // 2, W // 2
    Co = params["w1"].shape[0]                       # = dim (both convs output dim channels)
    C2, C4, Cout2 = 2 * C, 4 * C, 2 * Co
    Wc = ((Wo + 2 + 7) // 8) * 8                     # sublane-aligned padded width
    eps = 1e-5

    x = x.astype(jnp.float32)
    xr = x.reshape(B * Ho, 2, Wo, C2)                # free reshape: width space-to-depth

    w_taps = _pack_tap_weights(params["w1"], params["w2"], C, Co).astype(compute_dtype)
    bias = jnp.concatenate([params["b1"], params["b2"]]).reshape(1, Cout2).astype(jnp.float32)
    ln_g = params["ln_g"].reshape(1, C).astype(jnp.float32)
    ln_b = params["ln_b"].reshape(1, C).astype(jnp.float32)

    kernel1 = functools.partial(
        _merge_conv_kernel, H=H, W=W, C=C, Co=Co, Wc=Wc, eps=eps,
        compute_dtype=compute_dtype)

    y, sums = pl.pallas_call(
        kernel1,
        out_shape=(jax.ShapeDtypeStruct((B, Ho, Wo, Cout2), jnp.float32),
                   jax.ShapeDtypeStruct((B, 1, Cout2), jnp.float32)),
        grid=(B,),
        in_specs=[
            pl.BlockSpec((Ho, 2, Wo, C2), lambda bidx: (bidx, 0, 0, 0)),
            pl.BlockSpec((1, C), lambda bidx: (0, 0)),
            pl.BlockSpec((1, C), lambda bidx: (0, 0)),
            pl.BlockSpec((6, C4, Cout2), lambda bidx: (0, 0, 0)),
            pl.BlockSpec((1, Cout2), lambda bidx: (0, 0)),
        ],
        out_specs=(
            pl.BlockSpec((1, Ho, Wo, Cout2), lambda bidx: (bidx, 0, 0, 0)),
            pl.BlockSpec((1, 1, Cout2), lambda bidx: (bidx, 0, 0)),
        ),
        scratch_shapes=[pltpu.VMEM((Ho + 4, Wc, C4), jnp.float32)],
        compiler_params=pltpu.CompilerParams(dimension_semantics=("parallel",)),
    )(xr, ln_g, ln_b, w_taps, bias)

    # ---- tiny ECA channel gate (B, 2Co): conv1d(k=3, pad=1, no bias) + sigmoid -----
    pooled = sums[:, 0, :] / float(Ho * Wo)
    we = params["eca_w"].reshape(3)
    pz = jnp.pad(pooled, ((0, 0), (1, 1)))
    gate = jax.nn.sigmoid(pz[:, :-2] * we[0] + pz[:, 1:-1] * we[1] + pz[:, 2:] * we[2])

    y_flat = y.reshape(B, Ho * Wo, Cout2)            # free reshape
    gate3 = gate.reshape(B, 1, Cout2)

    out_t = pl.pallas_call(
        _eca_apply_kernel,
        out_shape=jax.ShapeDtypeStruct((B, Cout2, Ho * Wo), jnp.float32),
        grid=(B,),
        in_specs=[pl.BlockSpec((1, Ho * Wo, Cout2), lambda bidx: (bidx, 0, 0)),
                  pl.BlockSpec((1, 1, Cout2), lambda bidx: (bidx, 0, 0))],
        out_specs=pl.BlockSpec((1, Cout2, Ho * Wo), lambda bidx: (bidx, 0, 0)),
        compiler_params=pltpu.CompilerParams(dimension_semantics=("parallel",)),
    )(y_flat, gate3)

    return out_t.reshape(B, Cout2, Ho, Wo)           # NCHW, free reshape


# ---------------------------------------------------------------------------
# Pure-JAX reference (faithful f32 implementation of the PyTorch module)
# ---------------------------------------------------------------------------
def ref_patch_merging(x, params):
    B, L, C = x.shape
    H = W = int(round(math.sqrt(L)))
    eps = 1e-5
    mu = jnp.mean(x, axis=-1, keepdims=True)
    var = jnp.mean((x - mu) ** 2, axis=-1, keepdims=True)
    xn = (x - mu) / jnp.sqrt(var + eps) * params["ln_g"] + params["ln_b"]
    xi = xn.reshape(B, H, W, C).transpose(0, 3, 1, 2)            # NCHW

    o1 = jax.lax.conv_general_dilated(
        xi, params["w1"], (2, 2), ((0, 0), (0, 0)),
        dimension_numbers=("NCHW", "OIHW", "NCHW")) + params["b1"].reshape(1, -1, 1, 1)
    o2 = jax.lax.conv_general_dilated(
        xi, params["w2"], (2, 2), ((1, 1), (1, 1)),
        dimension_numbers=("NCHW", "OIHW", "NCHW")) + params["b2"].reshape(1, -1, 1, 1)
    xc = jnp.concatenate([o1, o2], axis=1)                        # (B, 2*dim, H/2, W/2)

    pooled = jnp.mean(xc, axis=(2, 3))                            # (B, 2*dim)
    we = params["eca_w"].reshape(3)
    pz = jnp.pad(pooled, ((0, 0), (1, 1)))
    g = jax.nn.sigmoid(pz[:, :-2] * we[0] + pz[:, 1:-1] * we[1] + pz[:, 2:] * we[2])
    return xc * (1.0 + g)[:, :, None, None]


if __name__ == "__main__":
    key = jax.random.PRNGKey(0)
    ks = jax.random.split(key, 8)
    B, dim, H = 2, 16, 16
    L = H * H

    x = jax.random.normal(ks[0], (B, L, dim), jnp.float32)
    params = {
        "ln_g": 1.0 + 0.1 * jax.random.normal(ks[1], (dim,), jnp.float32),
        "ln_b": 0.1 * jax.random.normal(ks[2], (dim,), jnp.float32),
        "w1": 0.05 * jax.random.normal(ks[3], (dim, dim, 2, 2), jnp.float32),
        "b1": 0.1 * jax.random.normal(ks[4], (dim,), jnp.float32),
        "w2": 0.05 * jax.random.normal(ks[5], (dim, dim, 4, 4), jnp.float32),
        "b2": 0.1 * jax.random.normal(ks[6], (dim,), jnp.float32),
        "eca_w": 0.5 * jax.random.normal(ks[7], (1, 1, 3), jnp.float32),
    }

    out = jax.jit(patch_merging_forward)(x, params)
    out = jax.block_until_ready(out)

    ref = ref_patch_merging(x, params)
    assert out.shape == (B, 2 * dim, H // 2, H // 2), out.shape
    # tolerance reflects bf16 MXU operands (f32 accumulation) in the Pallas path
    np.testing.assert_allclose(np.asarray(out), np.asarray(ref), rtol=2e-2, atol=2e-2)

    print("KERNEL_OK")
</pallas_src>

<mosaic_0001>
module attributes {stable_mosaic.version = 11 : i64} {
  func.func @_merge_conv_kernel(%arg0: i32, %arg1: memref<8x2x8x32xf32, #tpu.memory_space<vmem>>, %arg2: memref<1x16xf32, #tpu.memory_space<vmem>>, %arg3: memref<1x16xf32, #tpu.memory_space<vmem>>, %arg4: memref<6x64x32xbf16, #tpu.memory_space<vmem>>, %arg5: memref<1x32xf32, #tpu.memory_space<vmem>>, %arg6: memref<1x8x8x32xf32, #tpu.memory_space<vmem>>, %arg7: memref<1x1x32xf32, #tpu.memory_space<vmem>>, %arg8: memref<12x16x64xf32, #tpu.memory_space<vmem>>) attributes {dimension_semantics = [#tpu.dimension_semantics<parallel>], iteration_bounds = array<i64: 2>, scalar_prefetch = 0 : i64, scratch_operands = 1 : i64, tpu.core_type = #tpu.core_type<tc>, window_params = [{transform_indices = @transform_0, window_bounds = array<i64: 8, 2, 8, 32>}, {pipeline_mode = #tpu.pipeline_mode<synchronous>, transform_indices = @transform_1, window_bounds = array<i64: 1, 16>}, {pipeline_mode = #tpu.pipeline_mode<synchronous>, transform_indices = @transform_2, window_bounds = array<i64: 1, 16>}, {pipeline_mode = #tpu.pipeline_mode<synchronous>, transform_indices = @transform_3, window_bounds = array<i64: 6, 64, 32>}, {pipeline_mode = #tpu.pipeline_mode<synchronous>, transform_indices = @transform_4, window_bounds = array<i64: 1, 32>}, {transform_indices = @transform_5, window_bounds = array<i64: 1, 8, 8, 32>}, {transform_indices = @transform_6, window_bounds = array<i64: 1, 1, 32>}]} {
    %c0 = arith.constant 0 : index
    %c0_0 = arith.constant 0 : index
    %c0_1 = arith.constant 0 : index
    %c0_2 = arith.constant 0 : index
    %0 = vector.load %arg1[%c0, %c0_0, %c0_1, %c0_2] : memref<8x2x8x32xf32, #tpu.memory_space<vmem>>, vector<8x2x8x32xf32>
    %c0_3 = arith.constant 0 : index
    %c0_4 = arith.constant 0 : index
    %1 = vector.load %arg2[%c0_3, %c0_4] : memref<1x16xf32, #tpu.memory_space<vmem>>, vector<1x16xf32>
    %c0_5 = arith.constant 0 : index
    %c0_6 = arith.constant 0 : index
    %2 = vector.load %arg3[%c0_5, %c0_6] : memref<1x16xf32, #tpu.memory_space<vmem>>, vector<1x16xf32>
    %3 = vector.extract_strided_slice %0 {offsets = [0, 0, 0, 0], sizes = [8, 2, 8, 16], strides = [1, 1, 1, 1]} : vector<8x2x8x32xf32> to vector<8x2x8x16xf32>
    %cst = arith.constant dense<0.000000e+00> : vector<8x2x8xf32>
    %4 = vector.multi_reduction <add>, %3, %cst [3] : vector<8x2x8x16xf32> to vector<8x2x8xf32>
    %5 = vector.shape_cast %4 : vector<8x2x8xf32> to vector<8x2x8x1xf32>
    %cst_7 = arith.constant 1.600000e+01 : f32
    %6 = vector.broadcast %cst_7 : f32 to vector<8x2x8x1xf32>
    %7 = arith.divf %5, %6 : vector<8x2x8x1xf32>
    %8 = vector.broadcast %7 : vector<8x2x8x1xf32> to vector<8x2x8x16xf32>
    %9 = arith.subf %3, %8 : vector<8x2x8x16xf32>
    %10 = arith.mulf %9, %9 : vector<8x2x8x16xf32>
    %cst_8 = arith.constant dense<0.000000e+00> : vector<8x2x8xf32>
    %11 = vector.multi_reduction <add>, %10, %cst_8 [3] : vector<8x2x8x16xf32> to vector<8x2x8xf32>
    %12 = vector.shape_cast %11 : vector<8x2x8xf32> to vector<8x2x8x1xf32>
    %cst_9 = arith.constant 1.600000e+01 : f32
    %13 = vector.broadcast %cst_9 : f32 to vector<8x2x8x1xf32>
    %14 = arith.divf %12, %13 : vector<8x2x8x1xf32>
    %cst_10 = arith.constant 9.99999974E-6 : f32
    %15 = vector.broadcast %cst_10 : f32 to vector<8x2x8x1xf32>
    %16 = arith.addf %14, %15 : vector<8x2x8x1xf32>
    %17 = math.rsqrt %16 : vector<8x2x8x1xf32>
    %18 = vector.broadcast %17 : vector<8x2x8x1xf32> to vector<8x2x8x16xf32>
    %19 = arith.mulf %9, %18 : vector<8x2x8x16xf32>
    %20 = vector.shape_cast %1 : vector<1x16xf32> to vector<1x1x1x16xf32>
    %21 = vector.broadcast %20 : vector<1x1x1x16xf32> to vector<8x2x8x16xf32>
    %22 = arith.mulf %19, %21 : vector<8x2x8x16xf32>
    %23 = vector.shape_cast %2 : vector<1x16xf32> to vector<1x1x1x16xf32>
    %24 = vector.broadcast %23 : vector<1x1x1x16xf32> to vector<8x2x8x16xf32>
    %25 = arith.addf %22, %24 : vector<8x2x8x16xf32>
    %26 = vector.extract_strided_slice %0 {offsets = [0, 0, 0, 16], sizes = [8, 2, 8, 16], strides = [1, 1, 1, 1]} : vector<8x2x8x32xf32> to vector<8x2x8x16xf32>
    %cst_11 = arith.constant dense<0.000000e+00> : vector<8x2x8xf32>
    %27 = vector.multi_reduction <add>, %26, %cst_11 [3] : vector<8x2x8x16xf32> to vector<8x2x8xf32>
    %28 = vector.shape_cast %27 : vector<8x2x8xf32> to vector<8x2x8x1xf32>
    %cst_12 = arith.constant 1.600000e+01 : f32
    %29 = vector.broadcast %cst_12 : f32 to vector<8x2x8x1xf32>
    %30 = arith.divf %28, %29 : vector<8x2x8x1xf32>
    %31 = vector.broadcast %30 : vector<8x2x8x1xf32> to vector<8x2x8x16xf32>
    %32 = arith.subf %26, %31 : vector<8x2x8x16xf32>
    %33 = arith.mulf %32, %32 : vector<8x2x8x16xf32>
    %cst_13 = arith.constant dense<0.000000e+00> : vector<8x2x8xf32>
    %34 = vector.multi_reduction <add>, %33, %cst_13 [3] : vector<8x2x8x16xf32> to vector<8x2x8xf32>
    %35 = vector.shape_cast %34 : vector<8x2x8xf32> to vector<8x2x8x1xf32>
    %cst_14 = arith.constant 1.600000e+01 : f32
    %36 = vector.broadcast %cst_14 : f32 to vector<8x2x8x1xf32>
    %37 = arith.divf %35, %36 : vector<8x2x8x1xf32>
    %cst_15 = arith.constant 9.99999974E-6 : f32
    %38 = vector.broadcast %cst_15 : f32 to vector<8x2x8x1xf32>
    %39 = arith.addf %37, %38 : vector<8x2x8x1xf32>
    %40 = math.rsqrt %39 : vector<8x2x8x1xf32>
    %41 = vector.broadcast %40 : vector<8x2x8x1xf32> to vector<8x2x8x16xf32>
    %42 = arith.mulf %32, %41 : vector<8x2x8x16xf32>
    %43 = vector.shape_cast %1 : vector<1x16xf32> to vector<1x1x1x16xf32>
    %44 = vector.broadcast %43 : vector<1x1x1x16xf32> to vector<8x2x8x16xf32>
    %45 = arith.mulf %42, %44 : vector<8x2x8x16xf32>
    %46 = vector.shape_cast %2 : vector<1x16xf32> to vector<1x1x1x16xf32>
    %47 = vector.broadcast %46 : vector<1x1x1x16xf32> to vector<8x2x8x16xf32>
    %48 = arith.addf %45, %47 : vector<8x2x8x16xf32>
    %49 = tpu.concatenate %25, %48 in 3 : vector<8x2x8x16xf32>, vector<8x2x8x16xf32> -> vector<8x2x8x32xf32>
    %cst_16 = arith.constant 0.000000e+00 : f32
    %50 = vector.broadcast %cst_16 : f32 to vector<12x16x64xf32>
    %c0_17 = arith.constant 0 : index
    %c0_18 = arith.constant 0 : index
    %c0_19 = arith.constant 0 : index
    %51 = vector.load %arg8[%c0_17, %c0_18, %c0_19] : memref<12x16x64xf32, #tpu.memory_space<vmem>>, vector<12x16x64xf32>
    tpu.vector_store %arg8[%c0_17, %c0_18, %c0_19], %50 {strides = array<i32>} : memref<12x16x64xf32, #tpu.memory_space<vmem>>, vector<12x16x64xf32>,
    %52 = vector.extract_strided_slice %49 {offsets = [0, 0, 0, 0], sizes = [8, 1, 8, 32], strides = [1, 1, 1, 1]} : vector<8x2x8x32xf32> to vector<8x1x8x32xf32>
    %53 = vector.shape_cast %52 : vector<8x1x8x32xf32> to vector<8x8x32xf32>
    %c1 = arith.constant 1 : index
    %c1_20 = arith.constant 1 : index
    %c0_21 = arith.constant 0 : index
    %54 = vector.load %arg8[%c1, %c1_20, %c0_21] : memref<12x16x64xf32, #tpu.memory_space<vmem>>, vector<8x8x32xf32>
    tpu.vector_store %arg8[%c1, %c1_20, %c0_21], %53 {strides = array<i32>} : memref<12x16x64xf32, #tpu.memory_space<vmem>>, vector<8x8x32xf32>,
    %55 = vector.extract_strided_slice %49 {offsets = [0, 1, 0, 0], sizes = [8, 1, 8, 32], strides = [1, 1, 1, 1]} : vector<8x2x8x32xf32> to vector<8x1x8x32xf32>
    %56 = vector.shape_cast %55 : vector<8x1x8x32xf32> to vector<8x8x32xf32>
    %c2 = arith.constant 2 : index
    %c1_22 = arith.constant 1 : index
    %c32 = arith.constant 32 : index
    %57 = vector.load %arg8[%c2, %c1_22, %c32] : memref<12x16x64xf32, #tpu.memory_space<vmem>>, vector<8x8x32xf32>
    tpu.vector_store %arg8[%c2, %c1_22, %c32], %56 {strides = array<i32>} : memref<12x16x64xf32, #tpu.memory_space<vmem>>, vector<8x8x32xf32>,
    %c0_23 = arith.constant 0 : index
    %c0_24 = arith.constant 0 : index
    %c0_25 = arith.constant 0 : index
    %58 = vector.load %arg8[%c0_23, %c0_24, %c0_25] : memref<12x16x64xf32, #tpu.memory_space<vmem>>, vector<12x16x64xf32>
    %59 = vector.shape_cast %58 : vector<12x16x64xf32> to vector<192x64xf32>
    %cst_26 = arith.constant 0.000000e+00 : f32
    %60 = vector.broadcast %cst_26 : f32 to vector<128x32xf32>
    %61 = vector.extract_strided_slice %59 {offsets = [16, 0], sizes = [128, 64], strides = [1, 1]} : vector<192x64xf32> to vector<128x64xf32>
    %62 = arith.truncf %61 : vector<128x64xf32> to vector<128x64xbf16>
    %c0_27 = arith.constant 0 : index
    %c0_28 = arith.constant 0 : index
    %c0_29 = arith.constant 0 : index
    %63 = vector.load %arg4[%c0_27, %c0_28, %c0_29] : memref<6x64x32xbf16, #tpu.memory_space<vmem>>, vector<1x64x32xbf16>
    %64 = vector.shape_cast %63 : vector<1x64x32xbf16> to vector<64x32xbf16>
    %cst_30 = arith.constant dense<0.000000e+00> : vector<128x32xf32>
    %65 = tpu.matmul %62, %64, %cst_30 {dimension_numbers = #tpu.dot_dimension_numbers<[1], [0], [0], [1], [0, 0, 1, 1], [], []>} : vector<128x64xbf16>, vector<64x32xbf16>, vector<128x32xf32> -> vector<128x32xf32>
    %66 = arith.addf %60, %65 : vector<128x32xf32>
    %67 = vector.extract_strided_slice %59 {offsets = [17, 0], sizes = [128, 64], strides = [1, 1]} : vector<192x64xf32> to vector<128x64xf32>
    %68 = arith.truncf %67 : vector<128x64xf32> to vector<128x64xbf16>
    %c1_31 = arith.constant 1 : index
    %c0_32 = arith.constant 0 : index
    %c0_33 = arith.constant 0 : index
    %69 = vector.load %arg4[%c1_31, %c0_32, %c0_33] : memref<6x64x32xbf16, #tpu.memory_space<vmem>>, vector<1x64x32xbf16>
    %70 = vector.shape_cast %69 : vector<1x64x32xbf16> to vector<64x32xbf16>
    %cst_34 = arith.constant dense<0.000000e+00> : vector<128x32xf32>
    %71 = tpu.matmul %68, %70, %cst_34 {dimension_numbers = #tpu.dot_dimension_numbers<[1], [0], [0], [1], [0, 0, 1, 1], [], []>} : vector<128x64xbf16>, vector<64x32xbf16>, vector<128x32xf32> -> vector<128x32xf32>
    %72 = arith.addf %66, %71 : vector<128x32xf32>
    %73 = vector.extract_strided_slice %59 {offsets = [18, 0], sizes = [128, 64], strides = [1, 1]} : vector<192x64xf32> to vector<128x64xf32>
    %74 = arith.truncf %73 : vector<128x64xf32> to vector<128x64xbf16>
    %c2_35 = arith.constant 2 : index
    %c0_36 = arith.constant 0 : index
    %c0_37 = arith.constant 0 : index
    %75 = vector.load %arg4[%c2_35, %c0_36, %c0_37] : memref<6x64x32xbf16, #tpu.memory_space<vmem>>, vector<1x64x32xbf16>
    %76 = vector.shape_cast %75 : vector<1x64x32xbf16> to vector<64x32xbf16>
    %cst_38 = arith.constant dense<0.000000e+00> : vector<128x32xf32>
    %77 = tpu.matmul %74, %76, %cst_38 {dimension_numbers = #tpu.dot_dimension_numbers<[1], [0], [0], [1], [0, 0, 1, 1], [], []>} : vector<128x64xbf16>, vector<64x32xbf16>, vector<128x32xf32> -> vector<128x32xf32>
    %78 = arith.addf %72, %77 : vector<128x32xf32>
    %79 = vector.extract_strided_slice %59 {offsets = [32, 0], sizes = [128, 64], strides = [1, 1]} : vector<192x64xf32> to vector<128x64xf32>
    %80 = arith.truncf %79 : vector<128x64xf32> to vector<128x64xbf16>
    %c3 = arith.constant 3 : index
    %c0_39 = arith.constant 0 : index
    %c0_40 = arith.constant 0 : index
    %81 = vector.load %arg4[%c3, %c0_39, %c0_40] : memref<6x64x32xbf16, #tpu.memory_space<vmem>>, vector<1x64x32xbf16>
    %82 = vector.shape_cast %81 : vector<1x64x32xbf16> to vector<64x32xbf16>
    %cst_41 = arith.constant dense<0.000000e+00> : vector<128x32xf32>
    %83 = tpu.matmul %80, %82, %cst_41 {dimension_numbers = #tpu.dot_dimension_numbers<[1], [0], [0], [1], [0, 0, 1, 1], [], []>} : vector<128x64xbf16>, vector<64x32xbf16>, vector<128x32xf32> -> vector<128x32xf32>
    %84 = arith.addf %78, %83 : vector<128x32xf32>
    %85 = vector.extract_strided_slice %59 {offsets = [33, 0], sizes = [128, 64], strides = [1, 1]} : vector<192x64xf32> to vector<128x64xf32>
    %86 = arith.truncf %85 : vector<128x64xf32> to vector<128x64xbf16>
    %c4 = arith.constant 4 : index
    %c0_42 = arith.constant 0 : index
    %c0_43 = arith.constant 0 : index
    %87 = vector.load %arg4[%c4, %c0_42, %c0_43] : memref<6x64x32xbf16, #tpu.memory_space<vmem>>, vector<1x64x32xbf16>
    %88 = vector.shape_cast %87 : vector<1x64x32xbf16> to vector<64x32xbf16>
    %cst_44 = arith.constant dense<0.000000e+00> : vector<128x32xf32>
    %89 = tpu.matmul %86, %88, %cst_44 {dimension_numbers = #tpu.dot_dimension_numbers<[1], [0], [0], [1], [0, 0, 1, 1], [], []>} : vector<128x64xbf16>, vector<64x32xbf16>, vector<128x32xf32> -> vector<128x32xf32>
    %90 = arith.addf %84, %89 : vector<128x32xf32>
    %91 = vector.extract_strided_slice %59 {offsets = [34, 0], sizes = [128, 64], strides = [1, 1]} : vector<192x64xf32> to vector<128x64xf32>
    %92 = arith.truncf %91 : vector<128x64xf32> to vector<128x64xbf16>
    %c5 = arith.constant 5 : index
    %c0_45 = arith.constant 0 : index
    %c0_46 = arith.constant 0 : index
    %93 = vector.load %arg4[%c5, %c0_45, %c0_46] : memref<6x64x32xbf16, #tpu.memory_space<vmem>>, vector<1x64x32xbf16>
    %94 = vector.shape_cast %93 : vector<1x64x32xbf16> to vector<64x32xbf16>
    %cst_47 = arith.constant dense<0.000000e+00> : vector<128x32xf32>
    %95 = tpu.matmul %92, %94, %cst_47 {dimension_numbers = #tpu.dot_dimension_numbers<[1], [0], [0], [1], [0, 0, 1, 1], [], []>} : vector<128x64xbf16>, vector<64x32xbf16>, vector<128x32xf32> -> vector<128x32xf32>
    %96 = arith.addf %90, %95 : vector<128x32xf32>
    %c0_48 = arith.constant 0 : index
    %c0_49 = arith.constant 0 : index
    %97 = vector.load %arg5[%c0_48, %c0_49] : memref<1x32xf32, #tpu.memory_space<vmem>>, vector<1x32xf32>
    %98 = vector.broadcast %97 : vector<1x32xf32> to vector<128x32xf32>
    %99 = arith.addf %96, %98 : vector<128x32xf32>
    %100 = vector.shape_cast %99 : vector<128x32xf32> to vector<8x16x32xf32>
    %101 = vector.extract_strided_slice %100 {offsets = [0, 0, 0], sizes = [8, 8, 32], strides = [1, 1, 1]} : vector<8x16x32xf32> to vector<8x8x32xf32>
    %c0_50 = arith.constant 0 : index
    %c0_51 = arith.constant 0 : index
    %c0_52 = arith.constant 0 : index
    %c0_53 = arith.constant 0 : index
    %102 = vector.load %arg6[%c0_50, %c0_51, %c0_52, %c0_53] : memref<1x8x8x32xf32, #tpu.memory_space<vmem>>, vector<1x8x8x32xf32>
    %103 = vector.shape_cast %102 : vector<1x8x8x32xf32> to vector<8x8x32xf32>
    %104 = vector.shape_cast %101 : vector<8x8x32xf32> to vector<1x8x8x32xf32>
    tpu.vector_store %arg6[%c0_50, %c0_51, %c0_52, %c0_53], %104 {strides = array<i32>} : memref<1x8x8x32xf32, #tpu.memory_space<vmem>>, vector<1x8x8x32xf32>,
    %cst_54 = arith.constant dense<0.000000e+00> : vector<8x32xf32>
    %105 = vector.multi_reduction <add>, %101, %cst_54 [0] : vector<8x8x32xf32> to vector<8x32xf32>
    %cst_55 = arith.constant dense<0.000000e+00> : vector<32xf32>
    %106 = vector.multi_reduction <add>, %105, %cst_55 [0] : vector<8x32xf32> to vector<32xf32>
    %107 = vector.shape_cast %106 : vector<32xf32> to vector<1x32xf32>
    %c0_56 = arith.constant 0 : index
    %c0_57 = arith.constant 0 : index
    %c0_58 = arith.constant 0 : index
    %108 = vector.load %arg7[%c0_56, %c0_57, %c0_58] : memref<1x1x32xf32, #tpu.memory_space<vmem>>, vector<1x1x32xf32>
    %109 = vector.shape_cast %108 : vector<1x1x32xf32> to vector<1x32xf32>
    %110 = vector.shape_cast %107 : vector<1x32xf32> to vector<1x1x32xf32>
    tpu.vector_store %arg7[%c0_56, %c0_57, %c0_58], %110 {strides = array<i32>} : memref<1x1x32xf32, #tpu.memory_space<vmem>>, vector<1x1x32xf32>,
    return
  }
  func.func @transform_0(%arg0: i32) -> (i32, i32, i32, i32) {
    %c0_i32 = arith.constant 0 : i32
    %c0_i32_0 = arith.constant 0 : i32
    %c0_i32_1 = arith.constant 0 : i32
    %c0_i32_2 = arith.constant 0 : i32
    return %arg0, %c0_i32, %c0_i32_0, %c0_i32_1 : i32, i32, i32, i32
  }
  func.func @transform_1(%arg0: i32) -> (i32, i32) {
    %c0_i32 = arith.constant 0 : i32
    %c0_i32_0 = arith.constant 0 : i32
    %c0_i32_1 = arith.constant 0 : i32
    return %c0_i32, %c0_i32_0 : i32, i32
  }
  func.func @transform_2(%arg0: i32) -> (i32, i32) {
    %c0_i32 = arith.constant 0 : i32
    %c0_i32_0 = arith.constant 0 : i32
    %c0_i32_1 = arith.constant 0 : i32
    return %c0_i32, %c0_i32_0 : i32, i32
  }
  func.func @transform_3(%arg0: i32) -> (i32, i32, i32) {
    %c0_i32 = arith.constant 0 : i32
    %c0_i32_0 = arith.constant 0 : i32
    %c0_i32_1 = arith.constant 0 : i32
    %c0_i32_2 = arith.constant 0 : i32
    return %c0_i32, %c0_i32_0, %c0_i32_1 : i32, i32, i32
  }
  func.func @transform_4(%arg0: i32) -> (i32, i32) {
    %c0_i32 = arith.constant 0 : i32
    %c0_i32_0 = arith.constant 0 : i32
    %c0_i32_1 = arith.constant 0 : i32
    return %c0_i32, %c0_i32_0 : i32, i32
  }
  func.func @transform_5(%arg0: i32) -> (i32, i32, i32, i32) {
    %c0_i32 = arith.constant 0 : i32
    %c0_i32_0 = arith.constant 0 : i32
    %c0_i32_1 = arith.constant 0 : i32
    %c0_i32_2 = arith.constant 0 : i32
    return %arg0, %c0_i32, %c0_i32_0, %c0_i32_1 : i32, i32, i32, i32
  }
  func.func @transform_6(%arg0: i32) -> (i32, i32, i32) {
    %c0_i32 = arith.constant 0 : i32
    %c0_i32_0 = arith.constant 0 : i32
    %c0_i32_1 = arith.constant 0 : i32
    return %arg0, %c0_i32, %c0_i32_0 : i32, i32, i32
  }
}

module attributes {stable_mosaic.version = 11 : i64} {
  func.func @_eca_apply_kernel(%arg0: i32, %arg1: memref<1x64x32xf32, #tpu.memory_space<vmem>>, %arg2: memref<1x1x32xf32, #tpu.memory_space<vmem>>, %arg3: memref<1x32x64xf32, #tpu.memory_space<vmem>>) attributes {dimension_semantics = [#tpu.dimension_semantics<parallel>], iteration_bounds = array<i64: 2>, scalar_prefetch = 0 : i64, scratch_operands = 0 : i64, tpu.core_type = #tpu.core_type<tc>, window_params = [{transform_indices = @transform_0, window_bounds = array<i64: 1, 64, 32>}, {transform_indices = @transform_1, window_bounds = array<i64: 1, 1, 32>}, {transform_indices = @transform_2, window_bounds = array<i64: 1, 32, 64>}]} {
    %c0 = arith.constant 0 : index
    %c0_0 = arith.constant 0 : index
    %c0_1 = arith.constant 0 : index
    %0 = vector.load %arg1[%c0, %c0_0, %c0_1] : memref<1x64x32xf32, #tpu.memory_space<vmem>>, vector<1x64x32xf32>
    %1 = vector.shape_cast %0 : vector<1x64x32xf32> to vector<64x32xf32>
    %c0_2 = arith.constant 0 : index
    %c0_3 = arith.constant 0 : index
    %c0_4 = arith.constant 0 : index
    %2 = vector.load %arg2[%c0_2, %c0_3, %c0_4] : memref<1x1x32xf32, #tpu.memory_space<vmem>>, vector<1x1x32xf32>
    %3 = vector.shape_cast %2 : vector<1x1x32xf32> to vector<1x32xf32>
    %cst = arith.constant 1.000000e+00 : f32
    %4 = vector.broadcast %cst : f32 to vector<1x32xf32>
    %5 = arith.addf %4, %3 : vector<1x32xf32>
    %6 = vector.broadcast %5 : vector<1x32xf32> to vector<64x32xf32>
    %7 = arith.mulf %1, %6 : vector<64x32xf32>
    %8 = tpu.transpose %7, [1, 0] : vector<64x32xf32> -> vector<32x64xf32>
    %c0_5 = arith.constant 0 : index
    %c0_6 = arith.constant 0 : index
    %c0_7 = arith.constant 0 : index
    %9 = vector.load %arg3[%c0_5, %c0_6, %c0_7] : memref<1x32x64xf32, #tpu.memory_space<vmem>>, vector<1x32x64xf32>
    %10 = vector.shape_cast %9 : vector<1x32x64xf32> to vector<32x64xf32>
    %11 = vector.shape_cast %8 : vector<32x64xf32> to vector<1x32x64xf32>
    tpu.vector_store %arg3[%c0_5, %c0_6, %c0_7], %11 {strides = array<i32>} : memref<1x32x64xf32, #tpu.memory_space<vmem>>, vector<1x32x64xf32>,
    return
  }
  func.func @transform_0(%arg0: i32) -> (i32, i32, i32) {
    %c0_i32 = arith.constant 0 : i32
    %c0_i32_0 = arith.constant 0 : i32
    %c0_i32_1 = arith.constant 0 : i32
    return %arg0, %c0_i32, %c0_i32_0 : i32, i32, i32
  }
  func.func @transform_1(%arg0: i32) -> (i32, i32, i32) {
    %c0_i32 = arith.constant 0 : i32
    %c0_i32_0 = arith.constant 0 : i32
    %c0_i32_1 = arith.constant 0 : i32
    return %arg0, %c0_i32, %c0_i32_0 : i32, i32, i32
  }
  func.func @transform_2(%arg0: i32) -> (i32, i32, i32) {
    %c0_i32 = arith.constant 0 : i32
    %c0_i32_0 = arith.constant 0 : i32
    %c0_i32_1 = arith.constant 0 : i32
    return %arg0, %c0_i32, %c0_i32_0 : i32, i32, i32
  }
}

</mosaic_0001>

<bundles_post_ra>
// kernel: patch_merging_forward.3
= control target key start
LH: loop header
LB: loop body
LE: loop exit
PB: predicated region body
PF: predicated region fallthrough
CT: control target
= control target key end

     0   :  { %s328_s9 = smov 0   ;;  %s353_s0 = inlined_call_operand.vmem [shape: f32[2,64,32], index: 0, kind: input, shape index: {}]   ;;  %s354_s1 = inlined_call_operand.vmem [shape: f32[2,1,32], index: 1, kind: input, shape index: {}]   ;;  %s355_s2 = inlined_call_operand.vmem [shape: f32[2,32,64], index: 2, kind: output, shape index: {}]  }
   0x1 LB: > { %s283_s10 = sadd.s32 4294967295, %s311_s9   ;;  %p287_p0 = scmp.ge.s32.totalorder %s311_s9, 1  ;;  %s311_s9 = sphi %s328_s9, %s12_s9  }
   0x2   : > { %p120_p1 = scmp.lt.s32.totalorder %s311_s9, 3 }
   0x4   : > { %p121_p2 = pnand %p287_p0, %p120_p1 }
   0x5   : > { %p145_p3 = scmp.lt.s32.totalorder (!%p121_p2), %s283_s10, 1 }
   0x6   : > { %124 = sbr.rel (%p121_p2) target bundleno = 159 (0x9f), region = 28 }
   0xb   : > { %v169_v0 = vlaneseq  ;;  %s357_s10 = smov (!%p145_p3, %s283_s10), 1  ;;  %vm214_vm0 = vcmask 523264  }
   0xc   : > { %s294_s11 = sshll.u32 %s357_s10, 6  ;;  %s152_s14 = scalar_lea.vmem %s354_s1, %s357_s10 }
   0xd   : > { %v170_v1 = vshrl.u32 %v169_v0, 7  ;;  %s149_s17 = scalar_lea.vmem %s353_s0, %s294_s11  ;;  %v166_v3 = vld [vmem:[%s152_s14] sm:$0x1]  ;;  %s295_s18 = sshll.u32 %s357_s10, 5 }
   0xe   : > { %v167_v4 = vadd.f32 1.0, %v166_v3  ;;  %v158_v5 = vld [vmem:[%s149_s17] sm:$0xff]  ;;  %v159_v7 = vld [vmem:[%s149_s17 + $0x8] sm:$0xff]  ;;  %v160_v10 = vld [vmem:[%s149_s17 + $0x10] sm:$0xff]  ;;  %s157_s21 = scalar_lea.vmem %s355_s2, %s295_s18 }
   0xf   : > { %v171_v2 = vsub.s32 0, %v170_v1  ;;  %v161_v12 = vld [vmem:[%s149_s17 + $0x18] sm:$0xff]  ;;  %v162_v14 = vld [vmem:[%s149_s17 + $0x20] sm:$0xff]  ;;  %v163_v16 = vld [vmem:[%s149_s17 + $0x28] sm:$0xff] }
  0x10   : > { %v164_v18 = vld [vmem:[%s149_s17 + $0x30] sm:$0xff]  ;;  %v165_v20 = vld [vmem:[%s149_s17 + $0x38] sm:$0xff] }
  0x11   : > { %v172_v6 = vrot.slane %v167_v4, %v171_v2 }
  0x13   : > { %v174_v8 = vmul.f32 %v172_v6, %v158_v5  ;;  %v175_v9 = vmul.f32 %v172_v6, %v159_v7  ;;  %v176_v11 = vmul.f32 %v172_v6, %v160_v10  ;;  %v177_v13 = vmul.f32 %v172_v6, %v161_v12 }
  0x14   : > { %v178_v15 = vmul.f32 %v172_v6, %v162_v14  ;;  %v179_v17 = vmul.f32 %v172_v6, %v163_v16  ;;  %v180_v19 = vmul.f32 %v172_v6, %v164_v18  ;;  %v181_v21 = vmul.f32 %v172_v6, %v165_v20 }
  0x15   : > { %182 = vxpose.xlu0.b32.start [1/8] (short) (narrow) %v174_v8, 32 }
  0x19   : > { %183 = vxpose.xlu0.b32.cont [2/8] (short) (narrow) %v175_v9, 32 }
  0x1d   : > { %184 = vxpose.xlu0.b32.cont [3/8] (short) (narrow) %v176_v11, 32 }
  0x21   : > { %185 = vxpose.xlu0.b32.cont [4/8] (short) (narrow) %v177_v13, 32 }
  0x25   : > { %186 = vxpose.xlu0.b32.cont [5/8] (short) (narrow) %v178_v15, 32 }
  0x29   : > { %187 = vxpose.xlu0.b32.cont [6/8] (short) (narrow) %v179_v17, 32 }
  0x2d   : > { %188 = vxpose.xlu0.b32.cont [7/8] (short) (narrow) %v180_v19, 32 }
  0x31   : > { %189 = vxpose.xlu0.b32.end [8/8] (short) (narrow) %v181_v21, 32 }
  0x91   : > { %v198_v22 = vpop.trf.xlu0 }
  0x92   : > { %215 = vst.msk [vmem:[%s157_s21] sm:$0xff] %vm214_vm0, %v198_v22 }
  0x95   : > { %v199_v23 = vpop.trf.xlu0 }
  0x96   : > { %216 = vst.msk [vmem:[%s157_s21 + $0x8] sm:$0xff] %vm214_vm0, %v199_v23 }
  0x99   : > { %v200_v24 = vpop.trf.xlu0 }
  0x9a   : > { %217 = vst.msk [vmem:[%s157_s21 + $0x10] sm:$0xff] %vm214_vm0, %v200_v24 }
  0x9d   : > { %v201_v25 = vpop.trf.xlu0 }
  0x9e   : > { %218 = vst.msk [vmem:[%s157_s21 + $0x18] sm:$0xff] %vm214_vm0, %v201_v25 }
  0x9f PF: > { %s12_s9 = sadd.s32 1, %s311_s9  }
  0xa0   : > { %p9_p4 = scmp.ge.s32.totalorder %s12_s9, 4  }
  0xa2   :  { %11 = sbr.rel (!%p9_p4) target bundleno = 1 (0x1), region = 61 }

// kernel: patch_merging_forward.2
= control target key start
LH: loop header
LB: loop body
LE: loop exit
PB: predicated region body
PF: predicated region fallthrough
CT: control target
= control target key end

     0   :  { %s2611_s21 = smov 0   ;;  %s3513_s0 = inlined_call_operand.vmem [shape: f32[16,2,8,32], index: 0, kind: input, shape index: {}]   ;;  %s3514_s1 = inlined_call_operand.vmem [shape: f32[1,16], index: 1, kind: input, shape index: {}]   ;;  %s3515_s2 = inlined_call_operand.vmem [shape: f32[1,16], index: 2, kind: input, shape index: {}]   ;;  %s3516_s3 = inlined_call_operand.vmem [shape: bf16[6,64,32], index: 3, kind: input, shape index: {}]   ;;  %s3517_s4 = inlined_call_operand.vmem [shape: f32[1,32], index: 4, kind: input, shape index: {}]   ;;  %s3518_s5 = inlined_call_operand.vmem [shape: f32[2,8,8,32], index: 5, kind: output, shape index: {0}]   ;;  %s3519_s6 = inlined_call_operand.vmem [shape: f32[2,1,32], index: 6, kind: output, shape index: {1}]  }
   0x1 LB: > { %s2617_s22 = sadd.s32 4294967295, %s2570_s21   ;;  %p2123_p0 = scmp.ge.s32.totalorder %s2570_s21, 1  ;;  %s2570_s21 = sphi %s2611_s21, %s17_s21  }
   0x2   : > { %p217_p1 = scmp.lt.s32.totalorder %s2570_s21, 3 }
   0x4   : > { %p218_p2 = pnand %p2123_p0, %p217_p1 }
   0x5   : > { %s2124_s23 = sshll.u32 (!%p218_p2), %s2617_s22, 3  ;;  %s2572_s28 = smov (!%p218_p2), 112  }
   0x6   : > { %221 = sbr.rel (%p218_p2) target bundleno = 1201 (0x4b1), region = 40  ;;  %p252_p3 = scmp.lt.s32.totalorder (!%p218_p2), %s2124_s23, 15 }
   0x7   : > { %s2573_s7 = smov (!%p218_p2), 16   ;;  %p258_p4 = scmp.lt.s32.totalorder (!%p218_p2), %s2617_s22, 1 }
   0xb   : > { %s3521_s23 = smov (!%p252_p3, %s2124_s23), 15  ;;  %vm285_vm0 = vcmask 130048   ;;  %vm929_vm1 = vcmask 523264   ;;  %vm955_vm2 = vcmask 261120   ;;  %vm997_vm3 = vcmask 523520   ;;  %s3523_s22 = smov (!%p258_p4, %s2617_s22), 1 }
   0xc   : > { %s2246_s24 = sshll.u32 %s3521_s23, 4  ;;  %vm1051_vm4 = vsmask.f32 7424  ;;  %vm1404_vm5 = vcmask 1046528   ;;  %s2247_s15 = sshll.u32 %s3523_s22, 6  ;;  %vm2037_vm6 = vcmask 253952  }
   0xd   : > { %s2625_s27 = scalar_lea.vmem %s3513_s0, %s2246_s24  ;;  %s3456_s20 = scalar_lea.vmem %s3518_s5, %s2247_s15 }
   0xe   : > { %v2628_v0 = vld [vmem:[%s2625_s27 + $0x8] sm:$0xff]  ;;  %v2638_v2 = vld [vmem:[%s2625_s27 + $0x18] sm:$0xff]  ;;  %v2664_v8 = vld [vmem:[%s2625_s27] sm:$0xff]  ;;  %s265_s25 = scalar_lea.vmem %s3519_s6, %s3523_s22 }
   0xf   : > { %v2631_v1 = vld [vmem:[%s2625_s27 + $0x28] sm:$0xff]  ;;  %557 = vrot.lane.b32.xlu0 %v2628_v0, %s2572_s28  ;;  %v2641_v3 = vld [vmem:[%s2625_s27 + $0x38] sm:$0xff]  ;;  %v2667_v9 = vld [vmem:[%s2625_s27 + $0x10] sm:$0xff]  ;;  %v289_v36 = vsel %vm285_vm0, %v2628_v0, 0.0  ;;  %v295_v45 = vsel %vm285_vm0, %v2638_v2, 0.0 }
  0x10   : > { %565 = vrot.lane.b32.xlu1 %v2631_v1, %s2572_s28  ;;  %v2644_v4 = vld [vmem:[%s2625_s27 + $0x48] sm:$0xff]  ;;  %v2647_v5 = vld [vmem:[%s2625_s27 + $0x58] sm:$0xff]  ;;  %v2678_v10 = vld [vmem:[%s2625_s27 + $0x40] sm:$0xff]  ;;  %v301_v41 = vsel %vm285_vm0, %v2631_v1, 0.0  ;;  %v307_v44 = vsel %vm285_vm0, %v2641_v3, 0.0 }
  0x11   : > { %v2654_v6 = vld [vmem:[%s2625_s27 + $0x68] sm:$0xff]  ;;  %v2661_v7 = vld [vmem:[%s2625_s27 + $0x78] sm:$0xff]  ;;  %v2681_v11 = vld [vmem:[%s2625_s27 + $0x20] sm:$0xff]  ;;  %v319_v46 = vsel %vm285_vm0, %v2647_v5, 0.0  ;;  %v313_v60 = vsel %vm285_vm0, %v2644_v4, 0.0 }
  0x12   : > { %v2688_v12 = vld [vmem:[%s2625_s27 + $0x30] sm:$0xff]  ;;  %v2697_v21 = vld [vmem:[%s2625_s27 + $0x60] sm:$0xff]  ;;  %v325_v47 = vsel %vm285_vm0, %v2654_v6, 0.0 }
  0x13   : > { %561 = vrot.lane.b32.xlu0 %v2638_v2, %s2572_s28  ;;  %v2702_v22 = vld [vmem:[%s2625_s27 + $0x50] sm:$0xff] }
  0x14   : > { %569 = vrot.lane.b32.xlu1 %v2641_v3, %s2572_s28  ;;  %v2716_v39 = vld [vmem:[%s2625_s27 + $0x70] sm:$0xff] }
  0x17   : > { %573 = vrot.lane.b32.xlu0 %v2644_v4, %s2572_s28 }
  0x18   : > { %577 = vrot.lane.b32.xlu1 %v2647_v5, %s2572_s28 }
  0x1b   : > { %581 = vrot.lane.b32.xlu0 %v2654_v6, %s2572_s28 }
  0x1c   : > { %585 = vrot.lane.b32.xlu1 %v2661_v7, %s2572_s28 }
  0x1f   : > { %555 = vrot.lane.b32.xlu0 %v2664_v8, %s2572_s28 }
  0x20   : > { %559 = vrot.lane.b32.xlu1 %v2667_v9, %s2572_s28 }
  0x23   : > { %563 = vrot.lane.b32.xlu0 %v2681_v11, %s2572_s28 }
  0x24   : > { %571 = vrot.lane.b32.xlu1 %v2678_v10, %s2572_s28 }
  0x27   : > { %567 = vrot.lane.b32.xlu0 %v2688_v12, %s2572_s28 }
  0x81   : > { %v558_v13 = vpop.permute.xlu0 %557 }
  0x82   : > { %v566_v14 = vpop.permute.xlu1 %565  ;;  %v606_v15 = vsel %vm285_vm0, %v558_v13, 0.0 }
  0x83   : > { %607 = vadd.xlane.f32.xlu1 %v606_v15  ;;  %v618_v16 = vsel %vm285_vm0, %v566_v14, 0.0 }
  0x85   : > { %v562_v17 = vpop.permute.xlu0 %561 }
  0x86   : > { %v570_v18 = vpop.permute.xlu1 %569  ;;  %v612_v19 = vsel %vm285_vm0, %v562_v17, 0.0 }
  0x87   : > { %619 = vadd.xlane.f32.xlu1 %v618_v16  ;;  %613 = vadd.xlane.f32.xlu0 %v612_v19  ;;  %v624_v20 = vsel %vm285_vm0, %v570_v18, 0.0 }
  0x89   : > { %v574_v23 = vpop.permute.xlu0 %573 }
  0x8a   : > { %v630_v24 = vsel %vm285_vm0, %v574_v23, 0.0  ;;  %v578_v25 = vpop.permute.xlu1 %577 }
  0x8b   : > { %625 = vadd.xlane.f32.xlu0 %v624_v20  ;;  %v636_v28 = vsel %vm285_vm0, %v578_v25, 0.0  ;;  %v331_v20 = vsel %vm285_vm0, %v2661_v7, 0.0 }
  0x8d   : > { %v582_v26 = vpop.permute.xlu0 %581 }
  0x8e   : > { %v642_v27 = vsel %vm285_vm0, %v582_v26, 0.0  ;;  %v586_v29 = vpop.permute.xlu1 %585 }
  0x8f   : > { %v648_v30 = vsel %vm285_vm0, %v586_v29, 0.0 }
  0x91   : > { %v556_v31 = vpop.permute.xlu0 %555 }
  0x92   : > { %v603_v32 = vsel %vm285_vm0, %v556_v31, 0.0  ;;  %v560_v33 = vpop.permute.xlu1 %559 }
  0x93   : > { %v609_v34 = vsel %vm285_vm0, %v560_v33, 0.0 }
  0x95   : > { %v564_v35 = vpop.permute.xlu0 %563 }
  0x96   : > { %v615_v37 = vsel %vm285_vm0, %v564_v35, 0.0  ;;  %v572_v42 = vpop.permute.xlu1 %571 }
  0x97   : > { %v627_v43 = vsel %vm285_vm0, %v572_v42, 0.0  ;;  %v304_v42 = vsel %vm285_vm0, %v2688_v12, 0.0 }
  0x98   : > { %579 = vrot.lane.b32.xlu1 %v2697_v21, %s2572_s28 }
  0x99   : > { %v568_v38 = vpop.permute.xlu0 %567 }
  0x9a   : > { %v621_v40 = vsel %vm285_vm0, %v568_v38, 0.0 }
  0xa1   : > { %575 = vrot.lane.b32.xlu0 %v2702_v22, %s2572_s28 }
  0xbc   : > { %631 = vadd.xlane.f32.xlu1 %v630_v24 }
  0xc0   : > { %643 = vadd.xlane.f32.xlu1 %v642_v27  ;;  %637 = vadd.xlane.f32.xlu0 %v636_v28 }
  0xc4   : > { %649 = vadd.xlane.f32.xlu1 %v648_v30 }
  0xc8   : > { %604 = vadd.xlane.f32.xlu1 %v603_v32 }
  0xcc   : > { %610 = vadd.xlane.f32.xlu1 %v609_v34 }
  0xd0   : > { %290 = vadd.xlane.f32.xlu1 %v289_v36 }
  0xd4   : > { %616 = vadd.xlane.f32.xlu1 %v615_v37  ;;  %v286_v37 = vsel %vm285_vm0, %v2664_v8, 0.0 }
  0xd6   : > { %583 = vrot.lane.b32.xlu0 %v2716_v39, %s2572_s28 }
  0xd8   : > { %622 = vadd.xlane.f32.xlu1 %v621_v40  ;;  %v298_v40 = vsel %vm285_vm0, %v2681_v11, 0.0 }
  0xdc   : > { %302 = vadd.xlane.f32.xlu1 %v301_v41 }
  0xe0   : > { %628 = vadd.xlane.f32.xlu1 %v627_v43  ;;  %v310_v43 = vsel %vm285_vm0, %v2678_v10, 0.0 }
  0xe4   : > { %308 = vadd.xlane.f32.xlu1 %v307_v44 }
  0xf5   : > { %296 = vadd.xlane.f32.xlu0 %v295_v45  ;;  %v322_v45 = vsel %vm285_vm0, %v2697_v21, 0.0 }
  0xf9   : > { %320 = vadd.xlane.f32.xlu0 %v319_v46 }
  0xfd   : > { %326 = vadd.xlane.f32.xlu0 %v325_v47 }
 0x10c   : > { %v608_v48 = vpop.xlane.xlu1 %607 }
 0x10d   : > { %v652_v23 = vmul.f32 0.0625, %v608_v48 }
 0x10f   : > { %v2758_v24 = vsub.f32 %v2628_v0, %v652_v23 }
 0x110   : > { %v620_v49 = vpop.xlane.xlu1 %619  ;;  %v614_v50 = vpop.xlane.xlu0 %613 }
 0x111   : > { %v656_v51 = vmul.f32 0.0625, %v620_v49  ;;  %v654_v52 = vmul.f32 0.0625, %v614_v50  ;;  %v684_v28 = vmul.f32 %v2758_v24, %v2758_v24 }
 0x113   : > { %v2733_v53 = vsub.f32 %v2638_v2, %v654_v52  ;;  %v2736_v55 = vsub.f32 %v2631_v1, %v656_v51 }
 0x114   : > { %v626_v54 = vpop.xlane.xlu0 %625  ;;  %v580_v61 = vpop.permute.xlu1 %579 }
 0x115   : > { %v686_v56 = vmul.f32 %v2733_v53, %v2733_v53  ;;  %v688_v59 = vmul.f32 %v2736_v55, %v2736_v55  ;;  %v639_v62 = vsel %vm285_vm0, %v580_v61, 0.0  ;;  %v658_v25 = vmul.f32 0.0625, %v626_v54 }
 0x117   : > { %721 = vrot.lane.b32.xlu0 %v686_v56, %s2572_s28  ;;  %v2761_v26 = vsub.f32 %v2641_v3, %v658_v25  ;;  %v292_v56 = vsel %vm285_vm0, %v2667_v9, 0.0 }
 0x118   : > { %v576_v57 = vpop.permute.xlu0 %575 }
 0x119   : > { %v633_v58 = vsel %vm285_vm0, %v576_v57, 0.0  ;;  %v690_v31 = vmul.f32 %v2761_v26, %v2761_v26 }
 0x11a   : > { %634 = vadd.xlane.f32.xlu1 %v633_v58  ;;  %v316_v58 = vsel %vm285_vm0, %v2702_v22, 0.0 }
 0x11b   : > { %725 = vrot.lane.b32.xlu0 %v688_v59, %s2572_s28 }
 0x11e   : > { %314 = vadd.xlane.f32.xlu1 %v313_v60 }
 0x122   : > { %640 = vadd.xlane.f32.xlu1 %v639_v62 }
 0x145   : > { %v632_v63 = vpop.xlane.xlu1 %631 }
 0x146   : > { %v660_v27 = vmul.f32 0.0625, %v632_v63 }
 0x148   : > { %v2767_v29 = vsub.f32 %v2644_v4, %v660_v27 }
 0x149   : > { %v644_v13 = vpop.xlane.xlu1 %643  ;;  %v638_v14 = vpop.xlane.xlu0 %637 }
 0x14a   : > { %v664_v15 = vmul.f32 0.0625, %v644_v13  ;;  %v662_v30 = vmul.f32 0.0625, %v638_v14  ;;  %v692_v35 = vmul.f32 %v2767_v29, %v2767_v29 }
 0x14c   : > { %v2749_v16 = vsub.f32 %v2654_v6, %v664_v15  ;;  %v2773_v34 = vsub.f32 %v2647_v5, %v662_v30 }
 0x14d   : > { %v584_v17 = vpop.permute.xlu0 %583  ;;  %v650_v32 = vpop.xlane.xlu1 %649 }
 0x14e   : > { %v645_v18 = vsel %vm285_vm0, %v584_v17, 0.0  ;;  %v696_v19 = vmul.f32 %v2749_v16, %v2749_v16  ;;  %v666_v33 = vmul.f32 0.0625, %v650_v32  ;;  %v694_v38 = vmul.f32 %v2773_v34, %v2773_v34 }
 0x14f   : > { %646 = vadd.xlane.f32.xlu1 %v645_v18 }
 0x150   : > { %741 = vrot.lane.b32.xlu0 %v696_v19, %s2572_s28  ;;  %v2778_v36 = vsub.f32 %v2661_v7, %v666_v33 }
 0x151   : > { %v605_v44 = vpop.xlane.xlu1 %604 }
 0x152   : > { %v698_v41 = vmul.f32 %v2778_v36, %v2778_v36  ;;  %v651_v59 = vmul.f32 0.0625, %v605_v44 }
 0x153   : > { %332 = vadd.xlane.f32.xlu1 %v331_v20 }
 0x154   : > { %v2814_v60 = vsub.f32 %v2664_v8, %v651_v59 }
 0x155   : > { %v611_v46 = vpop.xlane.xlu1 %610 }
 0x156   : > { %v653_v48 = vmul.f32 0.0625, %v611_v46  ;;  %v683_v61 = vmul.f32 %v2814_v60, %v2814_v60 }
 0x158   : > { %v2798_v50 = vsub.f32 %v2667_v9, %v653_v48 }
 0x159   : > { %v291_v47 = vpop.xlane.xlu1 %290 }
 0x15a   : > { %v685_v54 = vmul.f32 %v2798_v50, %v2798_v50  ;;  %v336_v15 = vmul.f32 0.0625, %v291_v47 }
 0x15c   : > { %v2820_v19 = vsub.f32 %v2628_v0, %v336_v15 }
 0x15d   : > { %v617_v49 = vpop.xlane.xlu1 %616 }
 0x15e   : > { %v655_v51 = vmul.f32 0.0625, %v617_v49  ;;  %v368_v27 = vmul.f32 %v2820_v19, %v2820_v19 }
 0x160   : > { %v2801_v52 = vsub.f32 %v2681_v11, %v655_v51  ;;  %v386_v32 = vsel %vm285_vm0, %v368_v27, 0.0 }
 0x161   : > { %v623_v62 = vpop.xlane.xlu1 %622 }
 0x162   : > { %v687_v57 = vmul.f32 %v2801_v52, %v2801_v52 }
 0x164   : > { %717 = vrot.lane.b32.xlu1 %v684_v28, %s2572_s28 }
 0x165   : > { %v303_v63 = vpop.xlane.xlu1 %302 }
 0x168   : > { %729 = vrot.lane.b32.xlu1 %v690_v31, %s2572_s28 }
 0x169   : > { %v629_v13 = vpop.xlane.xlu1 %628 }
 0x16c   : > { %733 = vrot.lane.b32.xlu1 %v692_v35, %s2572_s28 }
 0x16d   : > { %v309_v17 = vpop.xlane.xlu1 %308 }
 0x16f   : > { %287 = vadd.xlane.f32.xlu0 %v286_v37 }
 0x170   : > { %737 = vrot.lane.b32.xlu1 %v694_v38, %s2572_s28 }
 0x173   : > { %299 = vadd.xlane.f32.xlu0 %v298_v40  ;;  %v340_v40 = vmul.f32 0.0625, %v303_v63 }
 0x174   : > { %745 = vrot.lane.b32.xlu1 %v698_v41, %s2572_s28  ;;  %v657_v41 = vmul.f32 0.0625, %v623_v62 }
 0x176   : > { %v2841_v46 = vsub.f32 %v2688_v12, %v657_v41 }
 0x177   : > { %305 = vadd.xlane.f32.xlu0 %v304_v42 }
 0x178   : > { %v689_v48 = vmul.f32 %v2841_v46, %v2841_v46 }
 0x17b   : > { %311 = vadd.xlane.f32.xlu0 %v310_v43  ;;  %v2835_v43 = vsub.f32 %v2631_v1, %v340_v40  ;;  %v659_v1 = vmul.f32 0.0625, %v629_v13 }
 0x17d   : > { %v372_v47 = vmul.f32 %v2835_v43, %v2835_v43  ;;  %v2850_v51 = vsub.f32 %v2678_v10, %v659_v1 }
 0x17e   : > { %v297_v14 = vpop.xlane.xlu0 %296 }
 0x17f   : > { %323 = vadd.xlane.f32.xlu0 %v322_v45  ;;  %v338_v18 = vmul.f32 0.0625, %v297_v14  ;;  %v328_v45 = vsel %vm285_vm0, %v2716_v39, 0.0  ;;  %v398_v49 = vsel %vm285_vm0, %v372_v47, 0.0 }
 0x181   : > { %v2825_v23 = vsub.f32 %v2638_v2, %v338_v18 }
 0x182   : > { %v2822_v20 = vpop.xlane.xlu0 %320 }
 0x183   : > { %v370_v30 = vmul.f32 %v2825_v23, %v2825_v23  ;;  %v346_v40 = vmul.f32 0.0625, %v2822_v20 }
 0x185   : > { %v392_v0 = vsel %vm285_vm0, %v370_v30, 0.0 }
 0x186   : > { %v327_v31 = vpop.xlane.xlu0 %326 }
 0x187   : > { %v348_v41 = vmul.f32 0.0625, %v327_v31 }
 0x18a   : > { %v722_v35 = vpop.permute.xlu0 %721 }
 0x18b   : > { %v772_v2 = vsel %vm285_vm0, %v722_v35, 0.0 }
 0x195   : > { %719 = vrot.lane.b32.xlu0 %v685_v54, %s2572_s28  ;;  %v691_v54 = vmul.f32 %v2850_v51, %v2850_v51 }
 0x198   : > { %293 = vadd.xlane.f32.xlu1 %v292_v56  ;;  %v726_v56 = vpop.permute.xlu0 %725 }
 0x199   : > { %723 = vrot.lane.b32.xlu0 %v687_v57, %s2572_s28  ;;  %v778_v57 = vsel %vm285_vm0, %v726_v56, 0.0 }
 0x19c   : > { %317 = vadd.xlane.f32.xlu1 %v316_v58 }
 0x1a3   : > { %v635_v25 = vpop.xlane.xlu1 %634 }
 0x1a4   : > { %v661_v13 = vmul.f32 0.0625, %v635_v25 }
 0x1a6   : > { %v2866_v18 = vsub.f32 %v2702_v22, %v661_v13 }
 0x1a7   : > { %v315_v28 = vpop.xlane.xlu1 %314 }
 0x1a8   : > { %v344_v63 = vmul.f32 0.0625, %v315_v28 }
 0x1aa   : > { %v2861_v14 = vsub.f32 %v2644_v4, %v344_v63 }
 0x1ab   : > { %v641_v33 = vpop.xlane.xlu1 %640 }
 0x1ac   : > { %v663_v4 = vmul.f32 0.0625, %v641_v33  ;;  %v2885_v33 = vsub.f32 %v2647_v5, %v346_v40 }
 0x1ad   : > { %715 = vrot.lane.b32.xlu1 %v683_v61, %s2572_s28  ;;  %v342_v61 = vmul.f32 0.0625, %v309_v17  ;;  %v376_v17 = vmul.f32 %v2861_v14, %v2861_v14 }
 0x1ae   : > { %v2876_v28 = vsub.f32 %v2697_v21, %v663_v4 }
 0x1af   : > { %v2858_v62 = vsub.f32 %v2641_v3, %v342_v61  ;;  %v693_v3 = vmul.f32 %v2866_v18, %v2866_v18  ;;  %v410_v25 = vsel %vm285_vm0, %v376_v17, 0.0 }
 0x1b0   : > { %v695_v30 = vmul.f32 %v2876_v28, %v2876_v28 }
 0x1b1   : > { %v374_v15 = vmul.f32 %v2858_v62, %v2858_v62 }
 0x1b3   : > { %v404_v27 = vsel %vm285_vm0, %v374_v15, 0.0 }
 0x1c2   : > { %v742_v5 = vpop.permute.xlu0 %741 }
 0x1d1   : > { %387 = vadd.xlane.f32.xlu1 %v386_v32 }
 0x1d5   : > { %393 = vadd.xlane.f32.xlu1 %v392_v0 }
 0x1d8   : > { %v647_v37 = vpop.xlane.xlu1 %646 }
 0x1d9   : > { %773 = vadd.xlane.f32.xlu1 %v772_v2 }
 0x1dc   : > { %v333_v38 = vpop.xlane.xlu1 %332 }
 0x1e0   : > { %v718_v42 = vpop.permute.xlu1 %717 }
 0x1e1   : > { %v766_v44 = vsel %vm285_vm0, %v718_v42, 0.0  ;;  %v665_v42 = vmul.f32 0.0625, %v647_v37 }
 0x1e2   : > { %767 = vadd.xlane.f32.xlu0 %v766_v44  ;;  %v2888_v44 = vsub.f32 %v2654_v6, %v348_v41 }
 0x1e3   : > { %v2893_v47 = vsub.f32 %v2716_v39, %v665_v42 }
 0x1e4   : > { %v730_v58 = vpop.permute.xlu1 %729  ;;  %v380_v20 = vmul.f32 %v2888_v44, %v2888_v44 }
 0x1e5   : > { %v784_v59 = vsel %vm285_vm0, %v730_v58, 0.0  ;;  %v697_v31 = vmul.f32 %v2893_v47, %v2893_v47 }
 0x1e6   : > { %329 = vadd.xlane.f32.xlu0 %v328_v45  ;;  %v378_v45 = vmul.f32 %v2885_v33, %v2885_v33  ;;  %v422_v37 = vsel %vm285_vm0, %v380_v20, 0.0 }
 0x1e8   : > { %v734_v32 = vpop.permute.xlu1 %733 }
 0x1e9   : > { %v790_v0 = vsel %vm285_vm0, %v734_v32, 0.0 }
 0x1ea   : > { %727 = vrot.lane.b32.xlu1 %v689_v48, %s2572_s28  ;;  %399 = vadd.xlane.f32.xlu0 %v398_v49  ;;  %v350_v48 = vmul.f32 0.0625, %v333_v38  ;;  %v416_v49 = vsel %vm285_vm0, %v378_v45, 0.0  ;;  %v2908_v38 = vld [vmem:[%s3514_s1] ss:$0 sm:$0xff] }
 0x1ec   : > { %v738_v35 = vpop.permute.xlu1 %737  ;;  %v2901_v6 = vsub.f32 %v2661_v7, %v350_v48 }
 0x1ed   : > { %v796_v2 = vsel %vm285_vm0, %v738_v35, 0.0 }
 0x1ee   : > { %v382_v56 = vmul.f32 %v2901_v6, %v2901_v6 }
 0x1f0   : > { %v428_v7 = vsel %vm285_vm0, %v382_v56, 0.0 }
 0x1f8   : > { %v288_v1 = vpop.xlane.xlu0 %287 }
 0x1fc   : > { %v300_v58 = vpop.xlane.xlu0 %299 }
 0x200   : > { %731 = vrot.lane.b32.xlu0 %v691_v54, %s2572_s28  ;;  %v802_v54 = vsel %vm285_vm0, %v742_v5, 0.0  ;;  %v306_v61 = vpop.xlane.xlu0 %305 }
 0x201   : > { %v341_v56 = vmul.f32 0.0625, %v306_v61 }
 0x204   : > { %v312_v63 = vpop.xlane.xlu0 %311 }
 0x208   : > { %v324_v15 = vpop.xlane.xlu0 %323 }
 0x20e   : > { %779 = vadd.xlane.f32.xlu1 %v778_v57  ;;  %v746_v57 = vpop.permute.xlu1 %745 }
 0x212   : > { %785 = vadd.xlane.f32.xlu1 %v784_v59  ;;  %v808_v59 = vsel %vm285_vm0, %v746_v57, 0.0  ;;  %v343_v57 = vmul.f32 0.0625, %v312_v63 }
 0x21f   : > { %405 = vadd.xlane.f32.xlu0 %v404_v27  ;;  %v335_v27 = vmul.f32 0.0625, %v288_v1 }
 0x221   : > { %v294_v13 = vpop.xlane.xlu1 %293 }
 0x223   : > { %735 = vrot.lane.b32.xlu1 %v693_v3, %s2572_s28  ;;  %411 = vadd.xlane.f32.xlu0 %v410_v25  ;;  %v2917_v3 = vsub.f32 %v2664_v8, %v335_v27  ;;  %v720_v25 = vpop.permute.xlu0 %719  ;;  %v2954_v27 = vsub.f32 %v2688_v12, %v341_v56 }
 0x224   : > { %v769_v48 = vsel %vm285_vm0, %v720_v25, 0.0 }
 0x225   : > { %v318_v17 = vpop.xlane.xlu1 %317  ;;  %v367_v32 = vmul.f32 %v2917_v3, %v2917_v3  ;;  %v373_v12 = vmul.f32 %v2954_v27, %v2954_v27 }
 0x226   : > { %v345_v63 = vmul.f32 0.0625, %v318_v17 }
 0x227   : > { %v724_v35 = vpop.permute.xlu0 %723  ;;  %v383_v40 = vsel %vm285_vm0, %v367_v32, 0.0 }
 0x229   : > { %v716_v4 = vpop.permute.xlu1 %715 }
 0x22a   : > { %v763_v45 = vsel %vm285_vm0, %v716_v4, 0.0  ;;  %v2959_v4 = vsub.f32 %v2678_v10, %v343_v57  ;;  %v2970_v10 = vsub.f32 %v2702_v22, %v345_v63 }
 0x239   : > { %739 = vrot.lane.b32.xlu0 %v695_v30, %s2572_s28  ;;  %v2922_v30 = vld [vmem:[%s3515_s2] ss:$0 sm:$0xff] }
 0x247   : > { %791 = vadd.xlane.f32.xlu1 %v790_v0 }
 0x24b   : > { %797 = vadd.xlane.f32.xlu1 %v796_v2  ;;  %v339_v2 = vmul.f32 0.0625, %v300_v58 }
 0x24d   : > { %v2933_v41 = vsub.f32 %v2681_v11, %v339_v2 }
 0x258   : > { %417 = vadd.xlane.f32.xlu0 %v416_v49  ;;  %v371_v49 = vmul.f32 %v2933_v41, %v2933_v41 }
 0x25a   : > { %v2927_v0 = vpop.xlane.xlu1 %387 }
 0x25c   : > { %743 = vrot.lane.b32.xlu1 %v697_v31, %s2572_s28  ;;  %423 = vadd.xlane.f32.xlu0 %v422_v37  ;;  %v395_v31 = vsel %vm285_vm0, %v371_v49, 0.0  ;;  %v337_v37 = vmul.f32 0.0625, %v294_v13  ;;  %s2575_s28 = smov 32  }
 0x25e   : > { %v2935_v42 = vpop.xlane.xlu1 %393 }
 0x25f   : > { %v434_v63 = vmul.f32 0.0625, %v2935_v42 }
 0x260   : > { %875 = vrot.lane.b32.xlu1 %v2908_v38, %s2573_s7  ;;  %803 = vadd.xlane.f32.xlu0 %v802_v54  ;;  %v775_v54 = vsel %vm285_vm0, %v724_v35, 0.0  ;;  %v347_v35 = vmul.f32 0.0625, %v324_v15  ;;  %v377_v15 = vmul.f32 %v2970_v10, %v2970_v10 }
 0x262   : > { %v2941_v5 = vpop.xlane.xlu1 %773  ;;  %v2975_v17 = vsub.f32 %v2697_v21, %v347_v35 }
 0x264   : > { %429 = vadd.xlane.f32.xlu0 %v428_v7  ;;  %v2948_v7 = vsub.f32 %v2667_v9, %v337_v37  ;;  %v2574_v37 = vmov 0.0  }
 0x265   : > { %932 = vst.msk [vmem:[#allocation2 + $0x10] sm:$0xff] %vm929_vm1, %v2574_v37  ;;  %933 = vst.msk [vmem:[#allocation2 + $0x18] sm:$0xff] %vm929_vm1, %v2574_v37 }
 0x266   : > { %v728_v1 = vpop.permute.xlu1 %727  ;;  %v369_v25 = vmul.f32 %v2948_v7, %v2948_v7  ;;  %934 = vst.msk [vmem:[#allocation2 + $0x20] sm:$0xff] %vm929_vm1, %v2574_v37  ;;  %935 = vst.msk [vmem:[#allocation2 + $0x28] sm:$0xff] %vm929_vm1, %v2574_v37 }
 0x267   : > { %v781_v58 = vsel %vm285_vm0, %v728_v1, 0.0  ;;  %936 = vst.msk [vmem:[#allocation2 + $0x30] sm:$0xff] %vm929_vm1, %v2574_v37  ;;  %937 = vst.msk [vmem:[#allocation2 + $0x38] sm:$0xff] %vm929_vm1, %v2574_v37  ;;  %v379_v1 = vmul.f32 %v2975_v17, %v2975_v17 }
 0x268   : > { %809 = vadd.xlane.f32.xlu0 %v808_v59  ;;  %v389_v32 = vsel %vm285_vm0, %v369_v25, 0.0  ;;  %938 = vst.msk [vmem:[#allocation2 + $0x40] sm:$0xff] %vm929_vm1, %v2574_v37  ;;  %939 = vst.msk [vmem:[#allocation2 + $0x48] sm:$0xff] %vm929_vm1, %v2574_v37 }
 0x269   : > { %940 = vst.msk [vmem:[#allocation2 + $0x50] sm:$0xff] %vm929_vm1, %v2574_v37  ;;  %941 = vst.msk [vmem:[#allocation2 + $0x58] sm:$0xff] %vm929_vm1, %v2574_v37  ;;  %v419_v56 = vsel %vm285_vm0, %v379_v1, 0.0 }
 0x26a   : > { %942 = vst.msk [vmem:[#allocation2 + $0x60] sm:$0xff] %vm929_vm1, %v2574_v37  ;;  %943 = vst.msk [vmem:[#allocation2 + $0x68] sm:$0xff] %vm929_vm1, %v2574_v37 }
 0x26b   : > { %v2930_v8 = vpop.xlane.xlu0 %767  ;;  %944 = vst.msk [vmem:[#allocation2 + $0x70] sm:$0xff] %vm929_vm1, %v2574_v37  ;;  %945 = vst.msk [vmem:[#allocation2 + $0x78] sm:$0xff] %vm929_vm1, %v2574_v37 }
 0x26c   : > { %946 = vst.msk [vmem:[#allocation2 + $0x80] sm:$0xff] %vm929_vm1, %v2574_v37  ;;  %947 = vst.msk [vmem:[#allocation2 + $0x88] sm:$0xff] %vm929_vm1, %v2574_v37 }
 0x26d   : > { %948 = vst.msk [vmem:[#allocation2 + $0x90] sm:$0xff] %vm929_vm1, %v2574_v37  ;;  %949 = vst.msk [vmem:[#allocation2 + $0x98] sm:$0xff] %vm929_vm1, %v2574_v37 }
 0x26e   : > { %950 = vst.msk [vmem:[#allocation2 + $0xa0] sm:$0xff] %vm929_vm1, %v2574_v37 }
 0x26f   : > { %v330_v20 = vpop.xlane.xlu0 %329 }
 0x273   : > { %v2944_v11 = vpop.xlane.xlu0 %399 }
 0x277   : > { %v732_v13 = vpop.permute.xlu0 %731 }
 0x278   : > { %v787_v9 = vsel %vm285_vm0, %v732_v13, 0.0 }
 0x27e   : > { %894 = vrot.lane.b32.xlu0 %v2922_v30, %s2573_s7 }
 0x284   : > { %384 = vadd.xlane.f32.xlu1 %v383_v40  ;;  %v375_v40 = vmul.f32 %v2959_v4, %v2959_v4 }
 0x286   : > { %v407_v49 = vsel %vm285_vm0, %v375_v40, 0.0  ;;  %v450_v40 = vadd.f32 1e-05, %v434_v63 }
 0x288   : > { %764 = vadd.xlane.f32.xlu1 %v763_v45 }
 0x28c   : > { %770 = vadd.xlane.f32.xlu1 %v769_v48  ;;  %v401_v48 = vsel %vm285_vm0, %v373_v12, 0.0  ;;  %v436_v12 = vmul.f32 0.0625, %v2944_v11 }
 0x290   : > { %396 = vadd.xlane.f32.xlu1 %v395_v31  ;;  %v349_v31 = vmul.f32 0.0625, %v330_v20  ;;  %v413_v20 = vsel %vm285_vm0, %v377_v15, 0.0 }
 0x292   : > { %v3000_v21 = vsub.f32 %v2716_v39, %v349_v31  ;;  %v452_v31 = vadd.f32 1e-05, %v436_v12 }
 0x294   : > { %776 = vadd.xlane.f32.xlu1 %v775_v54  ;;  %v381_v57 = vmul.f32 %v3000_v21, %v3000_v21 }
 0x296   : > { %v425_v13 = vsel %vm285_vm0, %v381_v57, 0.0 }
 0x297   : > { %v2951_v59 = vpop.xlane.xlu1 %779 }
 0x298   : > { %782 = vadd.xlane.f32.xlu1 %v781_v58 }
 0x29b   : > { %v2962_v61 = vpop.xlane.xlu1 %785 }
 0x29c   : > { %788 = vadd.xlane.f32.xlu1 %v787_v9  ;;  %v432_v9 = vmul.f32 0.0625, %v2927_v0  ;;  %v816_v0 = vmul.f32 0.0625, %v2951_v59 }
 0x29d   : > { %390 = vadd.xlane.f32.xlu0 %v389_v32 }
 0x29e   : > { %v448_v35 = vadd.f32 1e-05, %v432_v9 }
 0x29f   : > { %v736_v2 = vpop.permute.xlu1 %735 }
 0x2a0   : > { %v793_v45 = vsel %vm285_vm0, %v736_v2, 0.0  ;;  %v814_v2 = vmul.f32 0.0625, %v2941_v5  ;;  %2500 = vrsqrt.f32 %v448_v35 }
 0x2a1   : > { %402 = vadd.xlane.f32.xlu0 %v401_v48  ;;  %794 = vadd.xlane.f32.xlu1 %v793_v45  ;;  %v812_v45 = vmul.f32 0.0625, %v2930_v8  ;;  %2502 = vrsqrt.f32 %v450_v40  ;;  %v818_v8 = vmul.f32 0.0625, %v2962_v61 }
 0x2a2   : > { %2504 = vrsqrt.f32 %v452_v31 }
 0x2a3   : > { %v828_v42 = vadd.f32 1e-05, %v812_v45 }
 0x2a5   : > { %408 = vadd.xlane.f32.xlu0 %v407_v49 }
 0x2a8   : > { %v406_v22 = vpop.xlane.xlu0 %405 }
 0x2a9   : > { %414 = vadd.xlane.f32.xlu0 %v413_v20  ;;  %v830_v20 = vadd.f32 1e-05, %v814_v2  ;;  %v438_v1 = vmul.f32 0.0625, %v406_v22  ;;  %v2476_v22 = vld [vmem:[%s3516_s3 + $0x18] sm:$0xff]  }
 0x2aa   : > { %2344 = vmatprep.subr.bf16.mxu1 %v2476_v22 }
 0x2ab   : > { %2506 = vrsqrt.f32 %v830_v20  ;;  %2345 = vmatpush3.bf16.msra.mxu1 %v2476_v22  ;;  %v2478_v20 = vld [vmem:[%s3516_s3 + $0x38] sm:$0xff]   ;;  %v2481_v22 = vld [vmem:[%s3516_s3] sm:$0xff]  }
 0x2ac   : > { %v412_v54 = vpop.xlane.xlu0 %411  ;;  %2508 = vrsqrt.f32 %v828_v42  ;;  %2320 = vmatprep.subr.bf16.mxu0 %v2478_v20 }
 0x2ad   : > { %420 = vadd.xlane.f32.xlu0 %v419_v56  ;;  %v440_v48 = vmul.f32 0.0625, %v412_v54  ;;  %v832_v56 = vadd.f32 1e-05, %v816_v0  ;;  %v454_v54 = vadd.f32 1e-05, %v438_v1  ;;  %v2501_v63 = vpop.eup %2500  ;;  %v2479_v1 = vld [vmem:[%s3516_s3 + $0x8] sm:$0xff]   ;;  %2321 = vmatpush3.bf16.msra.mxu0 %v2478_v20 }
 0x2ae   : > { %v2503_v12 = vpop.eup %2502  ;;  %v480_v31 = vmul.f32 %v2501_v63, %v2820_v19 }
 0x2af   : > { %v456_v11 = vadd.f32 1e-05, %v440_v48  ;;  %v2505_v40 = vpop.eup %2504 }
 0x2b0   : > { %v740_v58 = vpop.permute.xlu0 %739 }
 0x2b1   : > { %v799_v39 = vsel %vm285_vm0, %v740_v58, 0.0  ;;  %426 = vadd.xlane.f32.xlu0 %v425_v13  ;;  %2510 = vrsqrt.f32 %v456_v11  ;;  %v834_v58 = vadd.f32 1e-05, %v818_v8  ;;  %v484_v11 = vmul.f32 %v2505_v40, %v2835_v43  ;;  %v2480_v43 = vld [vmem:[%s3516_s3 + $0x30] sm:$0xff]  }
 0x2b2   : > { %800 = vadd.xlane.f32.xlu1 %v799_v39  ;;  %v502_v8 = vmul.f32 %v2908_v38, %v480_v31  ;;  %2322 = vmatprep.subr.bf16.mxu0 %v2480_v43 }
 0x2b3   : > { %2323 = vmatpush3.bf16.msra.mxu0 %v2480_v43 }
 0x2b8   : > { %v2507_v48 = vpop.eup %2506 }
 0x2d0   : > { %v792_v25 = vpop.xlane.xlu1 %791 }
 0x2d1   : > { %v820_v15 = vmul.f32 0.0625, %v792_v25 }
 0x2d3   : > { %v836_v5 = vadd.f32 1e-05, %v820_v15  ;;  %v2509_v15 = vpop.eup %2508 }
 0x2d4   : > { %v798_v32 = vpop.xlane.xlu1 %797  ;;  %v2511_v0 = vpop.eup %2510 }
 0x2d5   : > { %2512 = vrsqrt.f32 %v836_v5  ;;  %v822_v59 = vmul.f32 0.0625, %v798_v32  ;;  %v2477_v32 = vld [vmem:[%s3516_s3 + $0x10] sm:$0xff]  }
 0x2d6   : > { %2514 = vrsqrt.f32 %v832_v56  ;;  %2346 = vmatprep.subr.bf16.mxu1 %v2477_v32 }
 0x2d7   : > { %2516 = vrsqrt.f32 %v454_v54  ;;  %v838_v61 = vadd.f32 1e-05, %v822_v59  ;;  %2347 = vmatpush3.bf16.msra.mxu1 %v2477_v32  ;;  %v506_v59 = vmul.f32 %v2908_v38, %v484_v11 }
 0x2d8   : > { %v744_v49 = vpop.permute.xlu1 %743  ;;  %2518 = vrsqrt.f32 %v834_v58  ;;  %2348 = vmatprep.subr.bf16.mxu1 %v2479_v1 }
 0x2d9   : > { %v805_v37 = vsel %vm285_vm0, %v744_v49, 0.0  ;;  %v482_v49 = vmul.f32 %v2503_v12, %v2825_v23 }
 0x2da   : > { %806 = vadd.xlane.f32.xlu1 %v805_v37 }
 0x2db   : > { %v504_v56 = vmul.f32 %v2908_v38, %v482_v49  ;;  %2349 = vmatpush3.bf16.msra.mxu1 %v2479_v1 }
 0x2dc   : > { %2350 = vmatprep.subr.bf16.mxu1 %v2481_v22 }
 0x2df   : > { %2351 = vmatpush3.bf16.msra.mxu1 %v2481_v22 }
 0x2e1   : > { %v418_v57 = vpop.xlane.xlu0 %417 }
 0x2e2   : > { %v442_v13 = vmul.f32 0.0625, %v418_v57  ;;  %v2513_v5 = vpop.eup %2512  ;;  %v3038_v57 = vpop.permute.xlu1 %875 }
 0x2e3   : > { %v2515_v19 = vpop.eup %2514 }
 0x2e4   : > { %v458_v39 = vadd.f32 1e-05, %v442_v13  ;;  %v862_v13 = vmul.f32 %v2507_v48, %v2733_v53  ;;  %v864_v12 = vmul.f32 %v2515_v19, %v2736_v55  ;;  %v526_v53 = vadd.f32 %v2922_v30, %v504_v56  ;;  %v2482_v55 = vld [vmem:[%s3516_s3 + $0x28] sm:$0xff]  }
 0x2e5   : > { %v424_v25 = vpop.xlane.xlu0 %423  ;;  %v528_v48 = vadd.f32 %v2922_v30, %v506_v59  ;;  %2324 = vmatprep.subr.bf16.mxu0 %v2482_v55 }
 0x2e6   : > { %v444_v9 = vmul.f32 0.0625, %v424_v25  ;;  %2520 = vrsqrt.f32 %v458_v39  ;;  %v488_v39 = vmul.f32 %v2511_v0, %v2861_v14  ;;  %v868_v25 = vmul.f32 %v2513_v5, %v2767_v29  ;;  %2325 = vmatpush3.bf16.msra.mxu0 %v2482_v55 }
 0x2e7   : > { %v881_v32 = vmul.f32 %v3038_v57, %v862_v13 }
 0x2e8   : > { %v460_v35 = vadd.f32 1e-05, %v444_v9  ;;  %v2517_v9 = vpop.eup %2516  ;;  %v510_v49 = vmul.f32 %v2908_v38, %v488_v39  ;;  %v887_v31 = vmul.f32 %v3038_v57, %v868_v25 }
 0x2e9   : > { %v804_v2 = vpop.xlane.xlu0 %803 }
 0x2ea   : > { %2522 = vrsqrt.f32 %v460_v35  ;;  %v824_v45 = vmul.f32 0.0625, %v804_v2  ;;  %v2519_v35 = vpop.eup %2518  ;;  %v524_v2 = vadd.f32 %v2922_v30, %v502_v8  ;;  %v532_v43 = vadd.f32 %v2922_v30, %v510_v49 }
 0x2eb   : > { %2524 = vrsqrt.f32 %v838_v61  ;;  %v860_v61 = vmul.f32 %v2509_v15, %v2758_v24  ;;  %v486_v15 = vmul.f32 %v2517_v9, %v2858_v62  ;;  %v866_v1 = vmul.f32 %v2519_v35, %v2761_v26 }
 0x2ec   : > { %v840_v37 = vadd.f32 1e-05, %v824_v45  ;;  %v883_v45 = vmul.f32 %v3038_v57, %v864_v12 }
 0x2ed   : > { %v430_v42 = vpop.xlane.xlu0 %429  ;;  %v879_v40 = vmul.f32 %v3038_v57, %v860_v61  ;;  %v508_v26 = vmul.f32 %v2908_v38, %v486_v15  ;;  %v3094_v61 = vld [vmem:[%s3516_s3 + $0x58] sm:$0xff]  }
 0x2ee   : > { %2526 = vrsqrt.f32 %v840_v37  ;;  %v446_v23 = vmul.f32 0.0625, %v430_v42 }
 0x2ef   : > { %v530_v9 = vadd.f32 %v2922_v30, %v508_v26 }
 0x2f0   : > { %v462_v54 = vadd.f32 1e-05, %v446_v23 }
 0x2f1   : > { %v810_v58 = vpop.xlane.xlu0 %809 }
 0x2f2   : > { %2528 = vrsqrt.f32 %v462_v54  ;;  %v826_v63 = vmul.f32 0.0625, %v810_v58  ;;  %v2483_v54 = vld [vmem:[%s3516_s3 + $0x20] sm:$0xff]  }
 0x2f3   : > { %v2521_v29 = vpop.eup %2520  ;;  %2326 = vmatprep.subr.bf16.mxu0 %v2483_v54 }
 0x2f4   : > { %v842_v14 = vadd.f32 1e-05, %v826_v63  ;;  %v490_v5 = vmul.f32 %v2521_v29, %v2885_v33  ;;  %v885_v33 = vmul.f32 %v3038_v57, %v866_v1  ;;  %2327 = vmatpush3.bf16.msra.mxu0 %v2483_v54 }
 0x2f5   : > { %v3057_v24 = vpop.permute.xlu0 %894  ;;  %2368 = vmatprep.subr.bf16.mxu0 %v3094_v61 }
 0x2f6   : > { %2530 = vrsqrt.f32 %v842_v14  ;;  %v900_v37 = vadd.f32 %v3057_v24, %v881_v32  ;;  %v898_v20 = vadd.f32 %v3057_v24, %v879_v40  ;;  %v902_v0 = vadd.f32 %v3057_v24, %v883_v45 }
 0x2f7   : > { %v2523_v42 = vpop.eup %2522  ;;  %v906_v11 = vadd.f32 %v3057_v24, %v887_v31  ;;  %v904_v13 = vadd.f32 %v3057_v24, %v885_v33 }
 0x2f8   : > { %v2525_v23 = vpop.eup %2524  ;;  %v916_v19 = vsel %vm285_vm0, %v526_v53, %v900_v37  ;;  %v914_v62 = vsel %vm285_vm0, %v524_v2, %v898_v20  ;;  %v918_v56 = vsel %vm285_vm0, %v528_v48, %v902_v0  ;;  %v492_v8 = vmul.f32 %v2523_v42, %v2888_v44 }
 0x2f9   : > { %974 = vrot.lane.b32.xlu1 %v916_v19, %s2575_s28  ;;  %972 = vrot.lane.b32.xlu0 %v914_v62, %s2575_s28  ;;  %v512_v44 = vmul.f32 %v2908_v38, %v490_v5  ;;  %v870_v59 = vmul.f32 %v2525_v23, %v2773_v34  ;;  %v922_v39 = vsel %vm285_vm0, %v532_v43, %v906_v11  ;;  %v3099_v34 = vld [vmem:[%s3516_s3 + $0x78] sm:$0xff]  }
 0x2fa   : > { %v514_v25 = vmul.f32 %v2908_v38, %v492_v8  ;;  %2392 = vmatprep.subr.bf16.mxu1 %v3099_v34 }
 0x2fb   : > { %v2527_v58 = vpop.eup %2526  ;;  %v534_v35 = vadd.f32 %v2922_v30, %v512_v44  ;;  %v889_v53 = vmul.f32 %v3038_v57, %v870_v59 }
 0x2fc   : > { %v872_v22 = vmul.f32 %v2527_v58, %v2749_v16  ;;  %v920_v16 = vsel %vm285_vm0, %v530_v9, %v904_v13  ;;  %v536_v2 = vadd.f32 %v2922_v30, %v514_v25 }
 0x2fd   : > { %976 = vrot.lane.b32.xlu1 %v918_v56, %s2575_s28  ;;  %980 = vrot.lane.b32.xlu0 %v922_v39, %s2575_s28  ;;  %v908_v40 = vadd.f32 %v3057_v24, %v889_v53 }
 0x2fe   : > { %v891_v63 = vmul.f32 %v3038_v57, %v872_v22 }
 0x2ff   : > { %v2529_v12 = vpop.eup %2528  ;;  %v924_v55 = vsel %vm285_vm0, %v534_v35, %v908_v40 }
 0x300   : > { %v910_v29 = vadd.f32 %v3057_v24, %v891_v63  ;;  %v494_v14 = vmul.f32 %v2529_v12, %v2901_v6 }
 0x301   : > { %978 = vrot.lane.b32.xlu1 %v920_v16, %s2575_s28 }
 0x302   : > { %v926_v32 = vsel %vm285_vm0, %v536_v2, %v910_v29  ;;  %v516_v48 = vmul.f32 %v2908_v38, %v494_v14 }
 0x303   : > { %v2531_v45 = vpop.eup %2530  ;;  %984 = vrot.lane.b32.xlu0 %v926_v32, %s2575_s28 }
 0x304   : > { %v874_v49 = vmul.f32 %v2531_v45, %v2778_v36  ;;  %v538_v31 = vadd.f32 %v2922_v30, %v516_v48 }
 0x305   : > { %982 = vrot.lane.b32.xlu1 %v924_v55, %s2575_s28 }
 0x306   : > { %v893_v6 = vmul.f32 %v3038_v57, %v874_v49 }
 0x308   : > { %v912_v15 = vadd.f32 %v3057_v24, %v893_v6 }
 0x30a   : > { %v928_v37 = vsel %vm285_vm0, %v538_v31, %v912_v15 }
 0x30b   : > { %986 = vrot.lane.b32.xlu1 %v928_v37, %s2575_s28 }
 0x30d   : > { %v385_v20 = vpop.xlane.xlu1 %384 }
 0x30e   : > { %v431_v0 = vmul.f32 0.0625, %v385_v20 }
 0x310   : > { %v447_v42 = vadd.f32 1e-05, %v431_v0 }
 0x311   : > { %v765_v11 = vpop.xlane.xlu1 %764 }
 0x312   : > { %2532 = vrsqrt.f32 %v447_v42  ;;  %v811_v1 = vmul.f32 0.0625, %v765_v11 }
 0x314   : > { %v827_v5 = vadd.f32 1e-05, %v811_v1 }
 0x315   : > { %v771_v36 = vpop.xlane.xlu1 %770 }
 0x316   : > { %2534 = vrsqrt.f32 %v827_v5  ;;  %v813_v56 = vmul.f32 0.0625, %v771_v36 }
 0x318   : > { %v829_v58 = vadd.f32 1e-05, %v813_v56 }
 0x319   : > { %v397_v23 = vpop.xlane.xlu1 %396 }
 0x31a   : > { %v435_v19 = vmul.f32 0.0625, %v397_v23 }
 0x31c   : > { %v451_v62 = vadd.f32 1e-05, %v435_v19 }
 0x31d   : > { %v777_v8 = vpop.xlane.xlu1 %776 }
 0x31e   : > { %2536 = vrsqrt.f32 %v451_v62  ;;  %v815_v54 = vmul.f32 0.0625, %v777_v8 }
 0x31f   : > { %v2533_v26 = vpop.eup %2532 }
 0x320   : > { %v479_v33 = vmul.f32 %v2533_v26, %v2917_v3  ;;  %v831_v43 = vadd.f32 1e-05, %v815_v54 }
 0x321   : > { %v783_v13 = vpop.xlane.xlu1 %782 }
 0x322   : > { %2538 = vrsqrt.f32 %v831_v43  ;;  %v817_v44 = vmul.f32 0.0625, %v783_v13  ;;  %v501_v39 = vmul.f32 %v2908_v38, %v479_v33 }
 0x323   : > { %v2535_v59 = vpop.eup %2534  ;;  %2540 = vrsqrt.f32 %v829_v58 }
 0x324   : > { %v859_v25 = vmul.f32 %v2535_v59, %v2814_v60  ;;  %v833_v63 = vadd.f32 1e-05, %v817_v44  ;;  %v523_v3 = vadd.f32 %v2922_v30, %v501_v39 }
 0x325   : > { %v789_v22 = vpop.xlane.xlu1 %788 }
 0x326   : > { %v878_v9 = vmul.f32 %v3038_v57, %v859_v25  ;;  %v819_v12 = vmul.f32 0.0625, %v789_v22  ;;  %v391_v16 = vpop.xlane.xlu0 %390  ;;  %2542 = vrsqrt.f32 %v833_v63 }
 0x327   : > { %v433_v35 = vmul.f32 0.0625, %v391_v16 }
 0x328   : > { %v897_v53 = vadd.f32 %v3057_v24, %v878_v9  ;;  %v835_v2 = vadd.f32 1e-05, %v819_v12 }
 0x329   : > { %v449_v29 = vadd.f32 1e-05, %v433_v35 }
 0x32a   : > { %v913_v14 = vsel %vm285_vm0, %v523_v3, %v897_v53  ;;  %v795_v32 = vpop.xlane.xlu1 %794  ;;  %v403_v60 = vpop.xlane.xlu0 %402 }
 0x32b   : > { %v2537_v40 = vpop.eup %2536  ;;  %956 = vst.msk [vmem:[#allocation2 + $0x11] sm:$0xff] %vm955_vm2, %v913_v14  ;;  %2544 = vrsqrt.f32 %v449_v29  ;;  %v821_v45 = vmul.f32 0.0625, %v795_v32  ;;  %v437_v55 = vmul.f32 0.0625, %v403_v60 }
 0x32c   : > { %v483_v48 = vmul.f32 %v2537_v40, %v2933_v41  ;;  %2546 = vrsqrt.f32 %v835_v2 }
 0x32d   : > { %v837_v49 = vadd.f32 1e-05, %v821_v45  ;;  %v453_v6 = vadd.f32 1e-05, %v437_v55 }
 0x32e   : > { %v409_v31 = vpop.xlane.xlu0 %408  ;;  %v505_v0 = vmul.f32 %v2908_v38, %v483_v48 }
 0x32f   : > { %v2539_v15 = vpop.eup %2538  ;;  %v439_v37 = vmul.f32 0.0625, %v409_v31  ;;  %2548 = vrsqrt.f32 %v453_v6 }
 0x330   : > { %v863_v20 = vmul.f32 %v2539_v15, %v2801_v52  ;;  %2550 = vrsqrt.f32 %v837_v49  ;;  %v2541_v11 = vpop.eup %2540  ;;  %v527_v62 = vadd.f32 %v2922_v30, %v505_v0 }
 0x331   : > { %v455_v42 = vadd.f32 1e-05, %v439_v37  ;;  %v861_v52 = vmul.f32 %v2541_v11, %v2798_v50 }
 0x332   : > { %v415_v1 = vpop.xlane.xlu0 %414  ;;  %v1006_v5 = vld [vmem:[#allocation2 + $0x10] sm:$0xff]  ;;  %v1007_v36 = vld [vmem:[#allocation2 + $0x18] sm:$0xff]  ;;  %v882_v23 = vmul.f32 %v3038_v57, %v863_v20 }
 0x333   : > { %2552 = vrsqrt.f32 %v455_v42  ;;  %v441_v41 = vmul.f32 0.0625, %v415_v1  ;;  %v3134_v19 = vpack.c.bf16 %v1007_v36, %v1006_v5  ;;  %v2543_v33 = vpop.eup %2542  ;;  %v880_v59 = vmul.f32 %v3038_v57, %v861_v52 }
 0x334   : > { %v901_v56 = vadd.f32 %v3057_v24, %v882_v23  ;;  %v865_v50 = vmul.f32 %v2543_v33, %v2841_v46 }
 0x335   : > { %v457_v8 = vadd.f32 1e-05, %v441_v41  ;;  %2352 = vmatprep.mubr.msk.bf16.mxu1 %vm929_vm1, %v3134_v19  ;;  %v899_v35 = vadd.f32 %v3057_v24, %v880_v59 }
 0x336   : > { %v421_v54 = vpop.xlane.xlu0 %420  ;;  %v917_v26 = vsel %vm285_vm0, %v527_v62, %v901_v56  ;;  %v884_v2 = vmul.f32 %v3038_v57, %v865_v50 }
 0x337   : > { %2554 = vrsqrt.f32 %v457_v8  ;;  %v443_v43 = vmul.f32 0.0625, %v421_v54  ;;  %958 = vst.msk [vmem:[#allocation2 + $0x31] sm:$0xff] %vm955_vm2, %v917_v26 }
 0x338   : > { %v2545_v58 = vpop.eup %2544  ;;  %v903_v40 = vadd.f32 %v3057_v24, %v884_v2 }
 0x339   : > { %v481_v13 = vmul.f32 %v2545_v58, %v2948_v7  ;;  %v459_v44 = vadd.f32 1e-05, %v443_v43  ;;  %v2547_v39 = vpop.eup %2546 }
 0x33a   : > { %v867_v12 = vmul.f32 %v2547_v39, %v2850_v51 }
 0x33b   : > { %2556 = vrsqrt.f32 %v459_v44  ;;  %v801_v25 = vpop.xlane.xlu1 %800  ;;  %v503_v22 = vmul.f32 %v2908_v38, %v481_v13  ;;  %v1055_v44 = vshll.u32 %v3134_v19, 16 }
 0x33c   : > { %v823_v9 = vmul.f32 0.0625, %v801_v25  ;;  %v2549_v63 = vpop.eup %2548  ;;  %v886_v60 = vmul.f32 %v3038_v57, %v867_v12 }
 0x33d   : > { %v525_v16 = vadd.f32 %v2922_v30, %v503_v22  ;;  %v2551_v3 = vpop.eup %2550  ;;  %v485_v7 = vmul.f32 %v2549_v63, %v2954_v27 }
 0x33e   : > { %v839_v53 = vadd.f32 1e-05, %v823_v9  ;;  %v869_v51 = vmul.f32 %v2551_v3, %v2866_v18  ;;  %v905_v18 = vadd.f32 %v3057_v24, %v886_v60  ;;  %v1057_v9 = vrot.slane %v1055_v44, 1 }
 0x33f   : > { %v915_v46 = vsel %vm285_vm0, %v525_v16, %v899_v35  ;;  %v507_v14 = vmul.f32 %v2908_v38, %v485_v7  ;;  %v2487_v16 = vld [vmem:[%s3516_s3 + $0x70] sm:$0xff]  }
 0x340   : > { %v2553_v29 = vpop.eup %2552  ;;  %2558 = vrsqrt.f32 %v839_v53  ;;  %957 = vst.msk [vmem:[#allocation2 + $0x21] sm:$0xff] %vm955_vm2, %v915_v46  ;;  %v888_v6 = vmul.f32 %v3038_v57, %v869_v51 }
 0x341   : > { %v487_v32 = vmul.f32 %v2553_v29, %v2959_v4  ;;  %v529_v27 = vadd.f32 %v2922_v30, %v507_v14 }
 0x342   : > { %v907_v0 = vadd.f32 %v3057_v24, %v888_v6 }
 0x343   : > { %v509_v45 = vmul.f32 %v2908_v38, %v487_v32  ;;  %v919_v48 = vsel %vm285_vm0, %v529_v27, %v903_v40 }
 0x344   : > { %v2555_v55 = vpop.eup %2554  ;;  %959 = vst.msk [vmem:[#allocation2 + $0x41] sm:$0xff] %vm955_vm2, %v919_v48 }
 0x345   : > { %v489_v49 = vmul.f32 %v2555_v55, %v2970_v10  ;;  %v531_v4 = vadd.f32 %v2922_v30, %v509_v45  ;;  %v2489_v55 = vld [vmem:[%s3516_s3 + $0x68] sm:$0xff]  }
 0x347   : > { %v511_v31 = vmul.f32 %v2908_v38, %v489_v49  ;;  %v921_v15 = vsel %vm285_vm0, %v531_v4, %v905_v18 }
 0x348   : > { %v2557_v37 = vpop.eup %2556  ;;  %960 = vst.msk [vmem:[#allocation2 + $0x51] sm:$0xff] %vm955_vm2, %v921_v15 }
 0x349   : > { %v533_v20 = vadd.f32 %v2922_v30, %v511_v31  ;;  %v491_v10 = vmul.f32 %v2557_v37, %v2975_v17  ;;  %v427_v17 = vpop.xlane.xlu0 %426 }
 0x34a   : > { %v445_v56 = vmul.f32 0.0625, %v427_v17 }
 0x34b   : > { %v923_v42 = vsel %vm285_vm0, %v533_v20, %v907_v0  ;;  %v513_v5 = vmul.f32 %v2908_v38, %v491_v10 }
 0x34c   : > { %961 = vst.msk [vmem:[#allocation2 + $0x61] sm:$0xff] %vm955_vm2, %v923_v42  ;;  %v461_v52 = vadd.f32 1e-05, %v445_v56 }
 0x34d   : > { %v2559_v11 = vpop.eup %2558  ;;  %v535_v41 = vadd.f32 %v2922_v30, %v513_v5  ;;  %v2490_v5 = vld [vmem:[%s3516_s3 + $0x60] sm:$0xff]  }
 0x34e   : > { %v871_v1 = vmul.f32 %v2559_v11, %v2876_v28  ;;  %2560 = vrsqrt.f32 %v461_v52 }
 0x350   : > { %v890_v36 = vmul.f32 %v3038_v57, %v871_v1 }
 0x352   : > { %v909_v23 = vadd.f32 %v3057_v24, %v890_v36 }
 0x354   : > { %v925_v62 = vsel %vm285_vm0, %v535_v41, %v909_v23 }
 0x355   : > { %962 = vst.msk [vmem:[#allocation2 + $0x71] sm:$0xff] %vm955_vm2, %v925_v62 }
 0x35b   : > { %v2561_v43 = vpop.eup %2560 }
 0x35c   : > { %v493_v59 = vmul.f32 %v2561_v43, %v3000_v21  ;;  %v1053_v21 = vshrl.u32 %v3134_v19, 16 }
 0x35e   : > { %v515_v3 = vmul.f32 %v2908_v38, %v493_v59  ;;  %v1058_v29 = vor.u32 %v1057_v9, %v1053_v21  ;;  %v2491_v59 = vld [vmem:[%s3516_s3 + $0x40] sm:$0xff]  }
 0x360   : > { %v537_v48 = vadd.f32 %v2922_v30, %v515_v3  ;;  %v2492_v3 = vld [vmem:[%s3516_s3 + $0x98] sm:$0xff]  }
 0x363   : > { %v807_v8 = vpop.xlane.xlu1 %806 }
 0x364   : > { %v825_v54 = vmul.f32 0.0625, %v807_v8 }
 0x366   : > { %v841_v26 = vadd.f32 1e-05, %v825_v54 }
 0x368   : > { %2562 = vrsqrt.f32 %v841_v26  ;;  %v2493_v26 = vld [vmem:[%s3516_s3 + $0xb8] sm:$0xff]  }
 0x36b   : > { %v975_v28 = vpop.permute.xlu1 %974  ;;  %v973_v33 = vpop.permute.xlu0 %972 }
 0x36c   : > { %999 = vst.msk [vmem:[#allocation2 + $0x31] sm:$0xff] %vm997_vm3, %v975_v28  ;;  %998 = vst.msk [vmem:[#allocation2 + $0x21] sm:$0xff] %vm997_vm3, %v973_v33 }
 0x36f   : > { %v977_v58 = vpop.permute.xlu1 %976  ;;  %v981_v13 = vpop.permute.xlu0 %980 }
 0x370   : > { %1000 = vst.msk [vmem:[#allocation2 + $0x41] sm:$0xff] %vm997_vm3, %v977_v58  ;;  %1002 = vst.msk [vmem:[#allocation2 + $0x61] sm:$0xff] %vm997_vm3, %v981_v13 }
 0x373   : > { %v979_v39 = vpop.permute.xlu1 %978  ;;  %v1008_v50 = vld [vmem:[#allocation2 + $0x20] sm:$0xff]  ;;  %v1009_v25 = vld [vmem:[#allocation2 + $0x28] sm:$0xff]  ;;  %v1010_v22 = vld [vmem:[#allocation2 + $0x30] sm:$0xff] }
 0x374   : > { %1001 = vst.msk [vmem:[#allocation2 + $0x51] sm:$0xff] %vm997_vm3, %v979_v39  ;;  %v3189_v63 = vpack.c.bf16 %v1009_v25, %v1008_v50  ;;  %v1011_v12 = vld [vmem:[#allocation2 + $0x38] sm:$0xff] }
 0x375   : > { %v2563_v35 = vpop.eup %2562  ;;  %v3195_v7 = vpack.c.bf16 %v1011_v12, %v1010_v22  ;;  %v985_v11 = vpop.permute.xlu0 %984 }
 0x376   : > { %v873_v53 = vmul.f32 %v2563_v35, %v2893_v47  ;;  %2353 = vmatmul.mubr.msk.bf16.vlgmr.msra.gmra.mxu1 %vm929_vm1, %v3189_v63  ;;  %v1060_v2 = vshll.u32 %v3189_v63, 16  ;;  %v1064_v40 = vshrl.u32 %v3189_v63, 16 }
 0x377   : > { %v983_v46 = vpop.permute.xlu1 %982  ;;  %2356 = vmatprep.mubr.msk.bf16.mxu1 %vm929_vm1, %v3195_v7  ;;  %v1068_v14 = vshll.u32 %v3195_v7, 16  ;;  %v1012_v38 = vld [vmem:[#allocation2 + $0x40] sm:$0xff]  ;;  %v1013_v51 = vld [vmem:[#allocation2 + $0x48] sm:$0xff]  ;;  %2393 = vmatpush3.bf16.msra.mxu1 %v3099_v34  ;;  %v1072_v34 = vshrl.u32 %v3195_v7, 16 }
 0x378   : > { %v1016_v32 = vld [vmem:[#allocation2 + $0x60] sm:$0xff]  ;;  %v892_v47 = vmul.f32 %v3038_v57, %v873_v53  ;;  %1003 = vst.msk [vmem:[#allocation2 + $0x71] sm:$0xff] %vm997_vm3, %v983_v46  ;;  %v1062_v60 = vrot.slane %v1060_v2, 1  ;;  %v3209_v27 = vpack.c.bf16 %v1013_v51, %v1012_v38  ;;  %v1017_v45 = vld [vmem:[#allocation2 + $0x68] sm:$0xff]  ;;  %2394 = vmatprep.subr.bf16.mxu1 %v2487_v16 }
 0x379   : > { %v1070_v49 = vrot.slane %v1068_v14, 1  ;;  %v3216_v6 = vpack.c.bf16 %v1017_v45, %v1016_v32 }
 0x37a   : > { %v911_v57 = vadd.f32 %v3057_v24, %v892_v47  ;;  %v1063_v18 = vsel %vm1051_vm4, %v1058_v29, %v1062_v60  ;;  %v1066_v4 = vor.u32 %v1064_v40, %v1062_v60  ;;  %v1076_v31 = vshll.u32 %v3209_v27, 16  ;;  %v2486_v24 = vld [vmem:[%s3516_s3 + $0x50] sm:$0xff]  }
 0x37b   : > { %2328 = vmatprep.mubr.msk.bf16.mxu0 %vm929_vm1, %v1063_v18  ;;  %v1074_v15 = vor.u32 %v1072_v34, %v1070_v49  ;;  %v1014_v37 = vld [vmem:[#allocation2 + $0x50] sm:$0xff]  ;;  %v1015_v20 = vld [vmem:[#allocation2 + $0x58] sm:$0xff]  ;;  %2395 = vmatpush3.bf16.msra.mxu1 %v2487_v16  ;;  %v1092_v41 = vshll.u32 %v3216_v6, 16  ;;  %v1080_v56 = vshrl.u32 %v3209_v27, 16  ;;  %v1096_v12 = vshrl.u32 %v3216_v6, 16 }
 0x37c   : > { %v927_v30 = vsel %vm285_vm0, %v537_v48, %v911_v57  ;;  %v3224_v0 = vsel %vm1051_vm4, %v1066_v4, %v1070_v49  ;;  %v1078_v10 = vrot.slane %v1076_v31, 1  ;;  %v3226_v42 = vpack.c.bf16 %v1015_v20, %v1014_v37  ;;  %2396 = vmatprep.subr.bf16.mxu1 %v2489_v55  ;;  %v2494_v34 = vld [vmem:[%s3516_s3 + $0x90] sm:$0xff]  }
 0x37d   : > { %963 = vst.msk [vmem:[#allocation2 + $0x81] sm:$0xff] %vm955_vm2, %v927_v30  ;;  %v987_v1 = vpop.permute.xlu1 %986  ;;  %2329 = vmatmul.mubr.msk.bf16.vlgmr.msra.gmra.mxu0 %vm929_vm1, %v3224_v0  ;;  %v1094_v43 = vrot.slane %v1092_v41, 1  ;;  %v1406_v47 = vrot.slane %v3189_v63, 1  ;;  %v1405_v40 = vrot.slane %v3134_v19, 1  ;;  %v1408_v19 = vrot.slane %v3195_v7, 1  ;;  %v1024_v41 = vld [vmem:[#allocation2 + $0xa0] sm:$0xff] }
 0x37e   : > { %1004 = vst.msk [vmem:[#allocation2 + $0x81] sm:$0xff] %vm997_vm3, %v985_v11  ;;  %1005 = vst.msk [vmem:[#allocation2 + $0x91] sm:$0xff] %vm997_vm3, %v987_v1  ;;  %2369 = vmatpush3.bf16.msra.mxu0 %v3094_v61  ;;  %2357 = vmatmul.mubr.msk.bf16.gmra.mxu1 %vm929_vm1, %v3209_v27  ;;  %v3243_v36 = vsel %vm1051_vm4, %v1074_v15, %v1078_v10  ;;  %v1084_v23 = vshll.u32 %v3226_v42, 16  ;;  %v2488_v61 = vld [vmem:[%s3516_s3 + $0x48] sm:$0xff]   ;;  %v1088_v8 = vshrl.u32 %v3226_v42, 16  ;;  %v1410_v49 = vrot.slane %v3209_v27, 1 }
 0x37f   : > { %2332 = vmatprep.mubr.msk.bf16.mxu0 %vm929_vm1, %v3243_v36  ;;  %2360 = vmatprep.mubr.msk.bf16.mxu1 %vm929_vm1, %v3226_v42  ;;  %v1018_v62 = vld [vmem:[#allocation2 + $0x70] sm:$0xff]  ;;  %v1019_v17 = vld [vmem:[#allocation2 + $0x78] sm:$0xff]  ;;  %v1082_v28 = vor.u32 %v1080_v56, %v1078_v10  ;;  %v1098_v21 = vor.u32 %v1096_v12, %v1094_v43  ;;  %v1407_v48 = vsel %vm1404_vm5, %v1405_v40, %v1406_v47  ;;  %v1412_v4 = vrot.slane %v3226_v42, 1  ;;  %v2499_v15 = vld [vmem:[%s3516_s3 + $0x80] sm:$0xff]  }
 0x380   : > { %2370 = vmatprep.subr.bf16.mxu0 %v2486_v24  ;;  %v1086_v52 = vrot.slane %v1084_v23, 1  ;;  %v3256_v54 = vpack.c.bf16 %v1019_v17, %v1018_v62  ;;  %2397 = vmatpush3.bf16.msra.mxu1 %v2489_v55  ;;  %v2495_v55 = vld [vmem:[%s3516_s3 + $0xb0] sm:$0xff]   ;;  %v1409_v57 = vsel %vm1404_vm5, %v1406_v47, %v1408_v19  ;;  %v1411_v18 = vsel %vm1404_vm5, %v1408_v19, %v1410_v49 }
 0x381   : > { %2398 = vmatprep.subr.bf16.mxu1 %v2490_v5  ;;  %v1414_v31 = vrot.slane %v3216_v6, 1  ;;  %v1413_v37 = vsel %vm1404_vm5, %v1410_v49, %v1412_v4 }
 0x382   : > { %2371 = vmatpush3.bf16.msra.mxu0 %v2486_v24  ;;  %v1090_v33 = vor.u32 %v1088_v8, %v1086_v52  ;;  %v1100_v58 = vshll.u32 %v3256_v54, 16  ;;  %v3263_v13 = vsel %vm1051_vm4, %v1082_v28, %v1086_v52  ;;  %v1104_v16 = vshrl.u32 %v3256_v54, 16 }
 0x383   : > { %2372 = vmatprep.subr.bf16.mxu0 %v2488_v61  ;;  %v1415_v20 = vsel %vm1404_vm5, %v1412_v4, %v1414_v31 }
 0x384   : > { %v3266_v44 = vsel %vm1051_vm4, %v1090_v33, %v1094_v43  ;;  %2399 = vmatpush3.bf16.msra.mxu1 %v2490_v5  ;;  %v1102_v25 = vrot.slane %v1100_v58, 1 }
 0x385   : > { %2333 = vmatmul.mubr.msk.bf16.gmra.mxu0 %vm929_vm1, %v3263_v13  ;;  %v1020_v39 = vld [vmem:[#allocation2 + $0x80] sm:$0xff]  ;;  %v1021_v50 = vld [vmem:[#allocation2 + $0x88] sm:$0xff]  ;;  %2440 = vmatprep.subr.bf16.mxu1 %v2493_v26  ;;  %v3281_v9 = vld [vmem:[#allocation2 + $0x90] sm:$0xff] }
 0x386   : > { %2336 = vmatprep.mubr.msk.bf16.mxu0 %vm929_vm1, %v3266_v44  ;;  %2361 = vmatmul.mubr.msk.bf16.gmra.mxu1 %vm929_vm1, %v3216_v6  ;;  %v3277_v22 = vpack.c.bf16 %v1021_v50, %v1020_v39  ;;  %v1106_v53 = vor.u32 %v1104_v16, %v1102_v25  ;;  %v3291_v46 = vpack.c.bf16 %v3281_v9, %v3281_v9  ;;  %v1023_v10 = vld [vmem:[#allocation2 + $0x98] sm:$0xff] }
 0x387   : > { %2364 = vmatprep.mubr.msk.bf16.mxu1 %vm929_vm1, %v3256_v54  ;;  %2373 = vmatpush3.bf16.msra.mxu0 %v2488_v61  ;;  %v3294_v29 = vsel %vm1051_vm4, %v1098_v21, %v1102_v25  ;;  %v1567_v11 = vpack.c.bf16 %v1023_v10, %v3281_v9 }
 0x388   : > { %v1108_v35 = vshll.u32 %v3277_v22, 16  ;;  %2374 = vmatprep.subr.bf16.mxu0 %v2491_v59  ;;  %v1112_v38 = vshrl.u32 %v3277_v22, 16  ;;  %v1116_v51 = vshll.u32 %v3291_v46, 16  ;;  %v1418_v30 = vrot.slane %v3277_v22, 1 }
 0x389   : > { %v1420_v1 = vrot.slane %v3291_v46, 1  ;;  %v1861_v23 = vrot.slane %v1567_v11, 1  ;;  %v1711_v62 = vshll.u32 %v1567_v11, 16 }
 0x38a   : > { %v1110_v2 = vrot.slane %v1108_v35, 1  ;;  %v1118_v60 = vrot.slane %v1116_v51, 1 }
 0x38b   : > { %2375 = vmatpush3.bf16.msra.mxu0 %v2491_v59  ;;  %v1421_v5 = vsel %vm1404_vm5, %v1418_v30, %v1420_v1  ;;  %v1713_v61 = vrot.slane %v1711_v62, 1 }
 0x38c   : > { %v3297_v14 = vsel %vm1051_vm4, %v1106_v53, %v1110_v2  ;;  %2416 = vmatprep.subr.bf16.mxu0 %v2492_v3  ;;  %v3309_v32 = vor.u32 %v1112_v38, %v1110_v2 }
 0x38d   : > { %2337 = vmatmul.mubr.msk.bf16.gmra.mxu0 %vm929_vm1, %v3294_v29 }
 0x38e   : > { %2340 = vmatprep.mubr.msk.bf16.mxu0 %vm929_vm1, %v3297_v14  ;;  %2365 = vmatmul.mubr.msk.bf16.gmra.mxu1 %vm929_vm1, %v3277_v22  ;;  %v1119_v45 = vsel %vm1051_vm4, %v3309_v32, %v1118_v60  ;;  %v1714_v52 = vsel %vm1051_vm4, %v3309_v32, %v1713_v61 }
 0x38f   : > { %2400 = vmatprep.mubr.msk.bf16.mxu1 %vm929_vm1, %v3189_v63  ;;  %v2497_v63 = vld [vmem:[%s3516_s3 + $0xa8] sm:$0xff]  }
 0x395   : > { %2341 = vmatmul.mubr.msk.bf16.gmra.mxu0 %vm929_vm1, %v1119_v45 }
 0x396   : > { %2376 = vmatprep.mubr.msk.bf16.mxu0 %vm929_vm1, %v1407_v48  ;;  %2401 = vmatmul.mubr.msk.bf16.vlgmr.msra.gmra.mxu1 %vm929_vm1, %v3195_v7  ;;  %v2498_v7 = vld [vmem:[%s3516_s3 + $0xa0] sm:$0xff]  }
 0x397   : > { %2404 = vmatprep.mubr.msk.bf16.mxu1 %vm929_vm1, %v3209_v27  ;;  %2441 = vmatpush3.bf16.msra.mxu1 %v2493_v26  ;;  %v2496_v27 = vld [vmem:[%s3516_s3 + $0x88] sm:$0xff]  }
 0x398   : > { %2442 = vmatprep.subr.bf16.mxu1 %v2495_v55 }
 0x39b   : > { %2443 = vmatpush3.bf16.msra.mxu1 %v2495_v55 }
 0x39c   : > { %2444 = vmatprep.subr.bf16.mxu1 %v2497_v63 }
 0x39d   : > { %2377 = vmatmul.mubr.msk.bf16.vlgmr.msra.gmra.mxu0 %vm929_vm1, %v1409_v57 }
 0x39e   : > { %2417 = vmatpush3.bf16.msra.mxu0 %v2492_v3  ;;  %2380 = vmatprep.mubr.msk.bf16.mxu0 %vm929_vm1, %v1411_v18 }
 0x39f   : > { %2405 = vmatmul.mubr.msk.bf16.gmra.mxu1 %vm929_vm1, %v3226_v42  ;;  %2418 = vmatprep.subr.bf16.mxu0 %v2494_v34 }
 0x3a0   : > { %2408 = vmatprep.mubr.msk.bf16.mxu1 %vm929_vm1, %v3216_v6  ;;  %2445 = vmatpush3.bf16.msra.mxu1 %v2497_v63  ;;  %v1416_v6 = vrot.slane %v3256_v54, 1 }
 0x3a1   : > { %2446 = vmatprep.subr.bf16.mxu1 %v2498_v7 }
 0x3a2   : > { %2419 = vmatpush3.bf16.msra.mxu0 %v2494_v34  ;;  %v1417_v42 = vsel %vm1404_vm5, %v1414_v31, %v1416_v6  ;;  %v1419_v24 = vsel %vm1404_vm5, %v1416_v6, %v1418_v30 }
 0x3a3   : > { %2420 = vmatprep.subr.bf16.mxu0 %v2496_v27 }
 0x3a4   : > { %2447 = vmatpush3.bf16.msra.mxu1 %v2498_v7 }
 0x3a5   : > { %2381 = vmatmul.mubr.msk.bf16.gmra.mxu0 %vm929_vm1, %v1413_v37 }
 0x3a6   : > { %2384 = vmatprep.mubr.msk.bf16.mxu0 %vm929_vm1, %v1415_v20  ;;  %2421 = vmatpush3.bf16.msra.mxu0 %v2496_v27 }
 0x3a7   : > { %2409 = vmatmul.mubr.msk.bf16.gmra.mxu1 %vm929_vm1, %v3256_v54  ;;  %2422 = vmatprep.subr.bf16.mxu0 %v2499_v15  ;;  %v1715_v54 = vshrl.u32 %v1567_v11, 16 }
 0x3a8   : > { %2412 = vmatprep.mubr.msk.bf16.mxu1 %vm929_vm1, %v3277_v22 }
 0x3a9   : > { %v1717_v26 = vor.u32 %v1715_v54, %v1713_v61 }
 0x3aa   : > { %2423 = vmatpush3.bf16.msra.mxu0 %v2499_v15 }
 0x3ad   : > { %2385 = vmatmul.mubr.msk.bf16.gmra.mxu0 %vm929_vm1, %v1417_v42 }
 0x3ae   : > { %2388 = vmatprep.mubr.msk.bf16.mxu0 %vm929_vm1, %v1419_v24 }
 0x3af   : > { %2413 = vmatmul.mubr.msk.bf16.gmra.mxu1 %vm929_vm1, %v1567_v11 }
 0x3b0   : > { %2448 = vmatprep.mubr.msk.bf16.mxu1 %vm929_vm1, %v1409_v57 }
 0x3b5   : > { %2389 = vmatmul.mubr.msk.bf16.gmra.mxu0 %vm929_vm1, %v1421_v5 }
 0x3b6   : > { %2424 = vmatprep.mubr.msk.bf16.mxu0 %vm929_vm1, %v3224_v0  ;;  %v1701_v0 = vpack.c.bf16 %v1024_v41, %v1024_v41 }
 0x3b7   : > { %2449 = vmatmul.mubr.msk.bf16.vlgmr.msra.gmra.mxu1 %vm929_vm1, %v1411_v18 }
 0x3b8   : > { %2452 = vmatprep.mubr.msk.bf16.mxu1 %vm929_vm1, %v1413_v37  ;;  %v1863_v17 = vrot.slane %v1701_v0, 1  ;;  %v1719_v56 = vshll.u32 %v1701_v0, 16 }
 0x3ba   : > { %v1864_v8 = vsel %vm1404_vm5, %v1861_v23, %v1863_v17  ;;  %v1721_v28 = vrot.slane %v1719_v56, 1 }
 0x3bc   : > { %v1722_v33 = vsel %vm1051_vm4, %v1717_v26, %v1721_v28 }
 0x3bd   : > { %2425 = vmatmul.mubr.msk.bf16.vlgmr.msra.gmra.mxu0 %vm929_vm1, %v3243_v36  ;;  %v1862_v36 = vsel %vm1404_vm5, %v1418_v30, %v1861_v23 }
 0x3be   : > { %2428 = vmatprep.mubr.msk.bf16.mxu0 %vm929_vm1, %v3263_v13 }
 0x3bf   : > { %2453 = vmatmul.mubr.msk.bf16.gmra.mxu1 %vm929_vm1, %v1415_v20 }
 0x3c0   : > { %2456 = vmatprep.mubr.msk.bf16.mxu1 %vm929_vm1, %v1417_v42 }
 0x3c5   : > { %2429 = vmatmul.mubr.msk.bf16.gmra.mxu0 %vm929_vm1, %v3266_v44 }
 0x3c6   : > { %2432 = vmatprep.mubr.msk.bf16.mxu0 %vm929_vm1, %v3294_v29 }
 0x3c7   : > { %2457 = vmatmul.mubr.msk.bf16.gmra.mxu1 %vm929_vm1, %v1419_v24 }
 0x3c8   : > { %2460 = vmatprep.mubr.msk.bf16.mxu1 %vm929_vm1, %v1862_v36 }
 0x3cd   : > { %2433 = vmatmul.mubr.msk.bf16.gmra.mxu0 %vm929_vm1, %v3297_v14 }
 0x3ce   : > { %2436 = vmatprep.mubr.msk.bf16.mxu0 %vm929_vm1, %v1714_v52 }
 0x3cf   : > { %2461 = vmatmul.mubr.msk.bf16.gmra.mxu1 %vm929_vm1, %v1864_v8 }
 0x3d5   : > { %2437 = vmatmul.mubr.msk.bf16.gmra.mxu0 %vm929_vm1, %v1722_v33 }
 0x436   : > { %v2354_v43 = vpop.f32.mrf.mxu1 }
 0x438   : > { %v3398_v58 = vpop.f32.mrf.mxu1 }
 0x43a   : > { %v2355_v13 = vpop.f32.mrf.mxu1 }
 0x43c   : > { %v1334_v44 = vpop.f32.mrf.mxu1 }
 0x43d   : > { %v2330_v59 = vpop.f32.mrf.mxu0 }
 0x43e   : > { %v3400_v39 = vpop.f32.mrf.mxu1  ;;  %v1339_v26 = vadd.f32 %v2354_v43, %v2330_v59 }
 0x43f   : > { %v1202_v50 = vpop.f32.mrf.mxu0 }
 0x440   : > { %v3402_v25 = vpop.f32.mrf.mxu1  ;;  %v1332_v13 = vadd.f32 %v3398_v58, %v1202_v50  ;;  %v3449_v58 = vld [vmem:[%s3517_s4] ss:$0 sm:$0xff] }
 0x441   : > { %v2331_v22 = vpop.f32.mrf.mxu0 }
 0x442   : > { %v2359_v9 = vpop.f32.mrf.mxu1 }
 0x443   : > { %v1205_v12 = vpop.f32.mrf.mxu0 }
 0x444   : > { %v1348_v16 = vpop.f32.mrf.mxu1 }
 0x445   : > { %v3404_v35 = vpop.f32.mrf.mxu0 }
 0x446   : > { %v3406_v3 = vpop.f32.mrf.mxu1  ;;  %v1353_v43 = vadd.f32 %v3400_v39, %v3404_v35 }
 0x447   : > { %v3408_v21 = vpop.f32.mrf.mxu0 }
 0x448   : > { %v3410_v53 = vpop.f32.mrf.mxu1 }
 0x449   : > { %v2335_v2 = vpop.f32.mrf.mxu0 }
 0x44a   : > { %v2363_v46 = vpop.f32.mrf.mxu1 }
 0x44b   : > { %v1219_v29 = vpop.f32.mrf.mxu0 }
 0x44c   : > { %v1362_v14 = vpop.f32.mrf.mxu1 }
 0x44d   : > { %v3412_v38 = vpop.f32.mrf.mxu0 }
 0x44e   : > { %v3414_v51 = vpop.f32.mrf.mxu1 }
 0x44f   : > { %v3416_v32 = vpop.f32.mrf.mxu0 }
 0x450   : > { %v3418_v47 = vpop.f32.mrf.mxu1 }
 0x451   : > { %v2339_v60 = vpop.f32.mrf.mxu0 }
 0x452   : > { %v2367_v40 = vpop.f32.mrf.mxu1 }
 0x453   : > { %v1233_v45 = vpop.f32.mrf.mxu0 }
 0x454   : > { %v1376_v55 = vpop.f32.mrf.mxu1  ;;  %v1346_v45 = vadd.f32 %v3402_v25, %v3408_v21 }
 0x455   : > { %v3420_v48 = vpop.f32.mrf.mxu0 }
 0x456   : > { %v2402_v19 = vpop.f32.mrf.mxu1 }
 0x457   : > { %v3422_v63 = vpop.f32.mrf.mxu0 }
 0x458   : > { %v1638_v49 = vpop.f32.mrf.mxu1 }
 0x459   : > { %v2343_v34 = vpop.f32.mrf.mxu0 }
 0x45a   : > { %v2403_v57 = vpop.f32.mrf.mxu1 }
 0x45b   : > { %v1247_v18 = vpop.f32.mrf.mxu0 }
 0x45c   : > { %v1641_v7 = vpop.f32.mrf.mxu1 }
 0x45d   : > { %v2378_v27 = vpop.f32.mrf.mxu0 }
 0x45e   : > { %v1560_v44 = vadd.f32 %v2378_v27, %v1339_v26 }
 0x45f   : > { %v2406_v4 = vpop.f32.mrf.mxu1  ;;  %v1504_v31 = vpop.f32.mrf.mxu0 }
 0x460   : > { %v1559_v12 = vadd.f32 %v1504_v31, %v1332_v13  ;;  %v1694_v46 = vadd.f32 %v2402_v19, %v1560_v44  ;;  %v1367_v31 = vadd.f32 %v3406_v3, %v3412_v38 }
 0x461   : > { %v3424_v15 = vpop.f32.mrf.mxu1  ;;  %v2379_v37 = vpop.f32.mrf.mxu0 }
 0x462   : > { %v1693_v60 = vadd.f32 %v1638_v49, %v1559_v12  ;;  %v1374_v12 = vadd.f32 %v3418_v47, %v3422_v63 }
 0x463   : > { %v2407_v20 = vpop.f32.mrf.mxu1  ;;  %v1507_v6 = vpop.f32.mrf.mxu0 }
 0x465   : > { %v1655_v30 = vpop.f32.mrf.mxu1  ;;  %v2382_v10 = vpop.f32.mrf.mxu0 }
 0x466   : > { %v1562_v55 = vadd.f32 %v2382_v10, %v1353_v43 }
 0x467   : > { %v3426_v42 = vpop.f32.mrf.mxu1  ;;  %v1518_v24 = vpop.f32.mrf.mxu0 }
 0x468   : > { %v1561_v49 = vadd.f32 %v1518_v24, %v1346_v45  ;;  %v1696_v21 = vadd.f32 %v2406_v4, %v1562_v55  ;;  %v1360_v4 = vadd.f32 %v3410_v53, %v3416_v32  ;;  %v1381_v32 = vadd.f32 %v3414_v51, %v3420_v48 }
 0x469   : > { %v3428_v11 = vpop.f32.mrf.mxu1  ;;  %v2383_v1 = vpop.f32.mrf.mxu0 }
 0x46a   : > { %v1695_v24 = vadd.f32 %v3424_v15, %v1561_v49 }
 0x46b   : > { %v2411_v5 = vpop.f32.mrf.mxu1  ;;  %v1521_v23 = vpop.f32.mrf.mxu0 }
 0x46d   : > { %v1669_v41 = vpop.f32.mrf.mxu1  ;;  %v2386_v0 = vpop.f32.mrf.mxu0 }
 0x46e   : > { %v1564_v41 = vadd.f32 %v2386_v0, %v1367_v31 }
 0x46f   : > { %v3430_v36 = vpop.f32.mrf.mxu1  ;;  %v1532_v62 = vpop.f32.mrf.mxu0 }
 0x470   : > { %v1698_v44 = vadd.f32 %v3426_v42, %v1564_v41 }
 0x471   : > { %v3432_v17 = vpop.f32.mrf.mxu1  ;;  %v2387_v61 = vpop.f32.mrf.mxu0 }
 0x473   : > { %v2415_v56 = vpop.f32.mrf.mxu1  ;;  %v1535_v52 = vpop.f32.mrf.mxu0 }
 0x474   : > { %v1563_v52 = vadd.f32 %v1532_v62, %v1360_v4 }
 0x475   : > { %v1683_v8 = vpop.f32.mrf.mxu1  ;;  %v3434_v54 = vpop.f32.mrf.mxu0 }
 0x476   : > { %v1566_v42 = vadd.f32 %v3434_v54, %v1381_v32 }
 0x477   : > { %v2450_v28 = vpop.f32.mrf.mxu1  ;;  %v3437_v33 = vpop.f32.mrf.mxu0 }
 0x478   : > { %v1700_v54 = vadd.f32 %v3430_v36, %v1566_v42 }
 0x479   : > { %v1929_v22 = vpop.f32.mrf.mxu1  ;;  %v2391_v9 = vpop.f32.mrf.mxu0 }
 0x47a   : > { %v1697_v9 = vadd.f32 %v3428_v11, %v1563_v52 }
 0x47b   : > { %v2451_v16 = vpop.f32.mrf.mxu1  ;;  %v1549_v2 = vpop.f32.mrf.mxu0 }
 0x47d   : > { %v1932_v29 = vpop.f32.mrf.mxu1  ;;  %v2426_v14 = vpop.f32.mrf.mxu0 }
 0x47e   : > { %v1843_v59 = vadd.f32 %v2426_v14, %v1694_v46 }
 0x47f   : > { %v2454_v50 = vpop.f32.mrf.mxu1  ;;  %v1787_v40 = vpop.f32.mrf.mxu0 }
 0x480   : > { %v1985_v19 = vadd.f32 %v2450_v28, %v1843_v59  ;;  %v1842_v34 = vadd.f32 %v1787_v40, %v1693_v60  ;;  %v1565_v60 = vadd.f32 %v3437_v33, %v1374_v12 }
 0x481   : > { %v1943_v39 = vpop.f32.mrf.mxu1  ;;  %v2427_v35 = vpop.f32.mrf.mxu0 }
 0x482   : > { %v2000_v57 = vadd.f32 %v3449_v58, %v1985_v19  ;;  %v1984_v18 = vadd.f32 %v1929_v22, %v1842_v34  ;;  %v1699_v34 = vadd.f32 %v3432_v17, %v1565_v60 }
 0x483   : > { %v2455_v7 = vpop.f32.mrf.mxu1  ;;  %v1790_v27 = vpop.f32.mrf.mxu0 }
 0x484   : > { %2008 = vst.msk [vmem:[%s3456_s20 + $0x8] sm:$0xff] %vm955_vm2, %v2000_v57  ;;  %v1999_v25 = vadd.f32 %v3449_v58, %v1984_v18  ;;  %v2016_v6 = vsel %vm955_vm2, %v2000_v57, 0.0 }
 0x485   : > { %v1946_v37 = vpop.f32.mrf.mxu1  ;;  %v2430_v20 = vpop.f32.mrf.mxu0 }
 0x486   : > { %2007 = vst.msk [vmem:[%s3456_s20] sm:$0xff] %vm955_vm2, %v1999_v25  ;;  %v2015_v30 = vsel %vm955_vm2, %v1999_v25, 0.0  ;;  %v1845_v10 = vadd.f32 %v2430_v20, %v1696_v21 }
 0x487   : > { %v2017_v1 = vadd.f32 %v2016_v6, %v2015_v30  ;;  %v2458_v5 = vpop.f32.mrf.mxu1  ;;  %v1801_v23 = vpop.f32.mrf.mxu0 }
 0x488   : > { %v1987_v3 = vadd.f32 %v2454_v50, %v1845_v10  ;;  %v1844_v38 = vadd.f32 %v1801_v23, %v1695_v24 }
 0x489   : > { %v1957_v61 = vpop.f32.mrf.mxu1  ;;  %v2431_v56 = vpop.f32.mrf.mxu0 }
 0x48a   : > { %v2002_v8 = vadd.f32 %v3449_v58, %v1987_v3  ;;  %v1986_v26 = vadd.f32 %v1943_v39, %v1844_v38 }
 0x48b   : > { %v2459_v28 = vpop.f32.mrf.mxu1  ;;  %v1804_v13 = vpop.f32.mrf.mxu0 }
 0x48c   : > { %2010 = vst.msk [vmem:[%s3456_s20 + $0x18] sm:$0xff] %vm955_vm2, %v2002_v8  ;;  %v2001_v15 = vadd.f32 %v3449_v58, %v1986_v26  ;;  %v2020_v29 = vsel %vm955_vm2, %v2002_v8, 0.0 }
 0x48d   : > { %v1960_v22 = vpop.f32.mrf.mxu1  ;;  %v2434_v53 = vpop.f32.mrf.mxu0 }
 0x48e   : > { %2009 = vst.msk [vmem:[%s3456_s20 + $0x10] sm:$0xff] %vm955_vm2, %v2001_v15  ;;  %v2018_v0 = vsel %vm955_vm2, %v2001_v15, 0.0  ;;  %v1847_v62 = vadd.f32 %v2434_v53, %v1698_v44 }
 0x48f   : > { %v2019_v16 = vadd.f32 %v2018_v0, %v2017_v1  ;;  %v2462_v2 = vpop.f32.mrf.mxu1  ;;  %v1815_v46 = vpop.f32.mrf.mxu0 }
 0x490   : > { %v1989_v51 = vadd.f32 %v2458_v5, %v1847_v62  ;;  %v1846_v48 = vadd.f32 %v1815_v46, %v1697_v9 }
 0x491   : > { %v2021_v14 = vadd.f32 %v2020_v29, %v2019_v16  ;;  %v1971_v43 = vpop.f32.mrf.mxu1  ;;  %v2435_v59 = vpop.f32.mrf.mxu0 }
 0x492   : > { %v2004_v11 = vadd.f32 %v3449_v58, %v1989_v51  ;;  %v1988_v50 = vadd.f32 %v1957_v61, %v1846_v48 }
 0x493   : > { %v2463_v47 = vpop.f32.mrf.mxu1  ;;  %v1818_v63 = vpop.f32.mrf.mxu0 }
 0x494   : > { %2012 = vst.msk [vmem:[%s3456_s20 + $0x28] sm:$0xff] %vm955_vm2, %v2004_v11  ;;  %v2003_v40 = vadd.f32 %v3449_v58, %v1988_v50  ;;  %v2024_v49 = vsel %vm955_vm2, %v2004_v11, 0.0 }
 0x495   : > { %v1974_v45 = vpop.f32.mrf.mxu1  ;;  %v2438_v55 = vpop.f32.mrf.mxu0 }
 0x496   : > { %2011 = vst.msk [vmem:[%s3456_s20 + $0x20] sm:$0xff] %vm955_vm2, %v2003_v40  ;;  %v2022_v19 = vsel %vm955_vm2, %v2003_v40, 0.0  ;;  %v1849_v33 = vadd.f32 %v2438_v55, %v1700_v54 }
 0x497   : > { %v2023_v39 = vadd.f32 %v2022_v19, %v2021_v14  ;;  %v1829_v35 = vpop.f32.mrf.mxu0 }
 0x498   : > { %v1991_v57 = vadd.f32 %v2462_v2, %v1849_v33  ;;  %v1848_v18 = vadd.f32 %v1829_v35, %v1699_v34 }
 0x499   : > { %v2025_v7 = vadd.f32 %v2024_v49, %v2023_v39  ;;  %v2439_v27 = vpop.f32.mrf.mxu0 }
 0x49a   : > { %v2006_v36 = vadd.f32 %v3449_v58, %v1991_v57  ;;  %v1990_v25 = vadd.f32 %v1971_v43, %v1848_v18 }
 0x49b   : > { %v1832_v21 = vpop.f32.mrf.mxu0 }
 0x49c   : > { %2014 = vst.msk [vmem:[%s3456_s20 + $0x38] sm:$0xff] %vm955_vm2, %v2006_v36  ;;  %v2005_v31 = vadd.f32 %v3449_v58, %v1990_v25  ;;  %v2028_v20 = vsel %vm955_vm2, %v2006_v36, 0.0 }
 0x49e   : > { %2013 = vst.msk [vmem:[%s3456_s20 + $0x30] sm:$0xff] %vm955_vm2, %v2005_v31  ;;  %v2026_v17 = vsel %vm955_vm2, %v2005_v31, 0.0 }
 0x49f   : > { %v2027_v37 = vadd.f32 %v2026_v17, %v2025_v7 }
 0x4a1   : > { %v2029_v6 = vadd.f32 %v2028_v20, %v2027_v37 }
 0x4a3   : > { %v2030_v30 = vsel %vm955_vm2, %v2029_v6, 0.0 }
 0x4a4   : > { %v2031_v10 = vrot.slane %v2030_v30, 4 }
 0x4a6   : > { %v2032_v24 = vadd.f32 %v2031_v10, %v2030_v30 }
 0x4a8   : > { %v2033_v1 = vrot.slane %v2032_v24, 2 }
 0x4aa   : > { %v2034_v5 = vadd.f32 %v2033_v1, %v2032_v24 }
 0x4ac   : > { %v2035_v23 = vrot.slane %v2034_v5, 1 }
 0x4ae   : > { %v2036_v58 = vadd.f32 %v2035_v23, %v2034_v5 }
 0x4b0   : > { %2038 = vst.msk [vmem:[%s265_s25] sm:$0x1] %vm2037_vm6, %v2036_v58 }
 0x4b1 PF: > { %s17_s21 = sadd.s32 1, %s2570_s21  }
 0x4b2   : > { %p14_p5 = scmp.ge.s32.totalorder %s17_s21, 4  }
 0x4b4   :  { %16 = sbr.rel (!%p14_p5) target bundleno = 1 (0x1), region = 89 }

</bundles_post_ra>
